<compile_context>
chip_gen: v5e
topology: v5e:2x2
jax: 0.10.0
libtpu: 0.0.40
codegen_flags: <defaults>
</compile_context>

<pallas_src>
import functools
import math

import jax
import jax.numpy as jnp
from jax.experimental import pallas as pl
from jax.experimental.pallas import tpu as pltpu


# Fixed ordering of the stacked per-(stage,layer) block parameters fed to the kernel.
_BLOCK_KEYS = (
    "ln1_g", "ln1_b",
    "wqkv", "bqkv", "wo", "bo",
    "ln2_g", "ln2_b",
    "we1", "be1", "we2", "be2",          # eeg expert FFN
    "wm1", "bm1", "wm2", "bm2",          # emg expert FFN
)


def _ln(x, g, b, eps):
    mu = jnp.mean(x, axis=-1, keepdims=True)
    var = jnp.mean(jnp.square(x - mu), axis=-1, keepdims=True)
    return (x - mu) * jax.lax.rsqrt(var + eps) * g + b


# ----------------------------------------------------------------------------
# The single fused kernel: grid = (stage, layer)
# ----------------------------------------------------------------------------
def _fused_kernel(xp_ref, wpe_ref, bpe_ref, pos_ref, cls_ref, mask_ref, *rest,
                  n_heads, d_head, n_cls, n_pad, split, eps):
    nw = len(_BLOCK_KEYS)
    (ln1_g, ln1_b, wqkv, bqkv, wo, bo, ln2_g, ln2_b,
     we1, be1, we2, be2, wm1, bm1, wm2, bm2) = rest[:nw]
    wpool, bpool, whead, bhead = rest[nw:nw + 4]
    out_ref, emb_ref = rest[nw + 4], rest[nw + 5]
    act_ref, ctx_ref = rest[nw + 6], rest[nw + 7]

    f32, bf16 = jnp.float32, jnp.bfloat16
    stage = pl.program_id(0)          # 0 = mono blocks, 1 = cross ('mix') blocks
    lay = pl.program_id(1)
    T, D = act_ref.shape
    Bn = split - n_pad                # patch tokens per modality stream

    # ---- prologue (first grid step): patch embedding + positional add + cls/pad rows ----
    @pl.when(jnp.logical_and(stage == 0, lay == 0))
    def _():
        pe = pos_ref[...]
        xe = (jnp.dot(xp_ref[0:Bn, :].astype(bf16), wpe_ref[0],
                      preferred_element_type=f32) + bpe_ref[0] + pe)
        xm = (jnp.dot(xp_ref[Bn:, :].astype(bf16), wpe_ref[1],
                      preferred_element_type=f32) + bpe_ref[1] + pe)
        act_ref[0:n_pad, :] = jnp.broadcast_to(cls_ref[...], (n_pad, D))
        act_ref[n_pad:split, :] = xe
        act_ref[split:, :] = xm

    xf = act_ref[...]

    # ---- pre-LN fused-QKV multi-head self-attention (1/sqrt(d_head) folded into wq) ----
    h = _ln(xf, ln1_g[...], ln1_b[...], eps)
    qkv = jnp.dot(h.astype(bf16), wqkv[...], preferred_element_type=f32) + bqkv[...]
    mask = mask_ref[...]
    for i in range(n_heads):
        lo = i * d_head
        q = qkv[:, lo:lo + d_head].astype(bf16)
        k = qkv[:, D + lo:D + lo + d_head].astype(bf16)
        v = qkv[:, 2 * D + lo:2 * D + lo + d_head].astype(bf16)
        s = jax.lax.dot_general(q, k, (((1,), (1,)), ((), ())),
                                preferred_element_type=f32) + mask
        s = s - jnp.max(s, axis=-1, keepdims=True)
        p = jnp.exp(s)
        p = p * pl.reciprocal(jnp.sum(p, axis=-1, keepdims=True), approx=True)
        ctx_ref[:, lo:lo + d_head] = jnp.dot(p.astype(bf16), v,
                                             preferred_element_type=f32)
    x1 = xf + jnp.dot(ctx_ref[...].astype(bf16), wo[...],
                      preferred_element_type=f32) + bo[...]

    # ---- pre-LN modality-expert FFN: static-slice routing (no wasted expert compute) ----
    h2 = _ln(x1, ln2_g[...], ln2_b[...], eps)
    fe = (jnp.dot(jax.nn.gelu(
              jnp.dot(h2[0:split, :].astype(bf16), we1[...],
                      preferred_element_type=f32) + be1[...]).astype(bf16),
          we2[...], preferred_element_type=f32) + be2[...])
    fm = (jnp.dot(jax.nn.gelu(
              jnp.dot(h2[split:, :].astype(bf16), wm1[...],
                      preferred_element_type=f32) + bm1[...]).astype(bf16),
          wm2[...], preferred_element_type=f32) + bm2[...])

    # cls (+pad) rows are frozen during the mono stage; they only participate in the cross stage.
    row = jax.lax.broadcasted_iota(jnp.int32, (split, 1), 0)
    keep = jnp.logical_and(stage == 0, row < n_pad)
    x2_top = jnp.where(keep, xf[0:split, :], x1[0:split, :] + fe)
    act_ref[0:split, :] = x2_top
    act_ref[split:, :] = x1[split:, :] + fm

    # ---- epilogue (last grid step): pooler (tanh) + classification head on cls rows ----
    @pl.when(jnp.logical_and(stage == 1, lay == pl.num_programs(1) - 1))
    def _():
        ce = jnp.tanh(jnp.dot(x2_top[0:n_cls, :].astype(bf16), wpool[...],
                              preferred_element_type=f32) + bpool[...])
        emb_ref[...] = ce
        out_ref[...] = (jnp.dot(ce.astype(bf16), whead[...],
                                preferred_element_type=f32) + bhead[...])


# ----------------------------------------------------------------------------
# Model forward (only tiny layout glue in plain JAX; all dense compute in the kernel)
# ----------------------------------------------------------------------------
def model_forward(params, x, label, cfg):
    B = x.shape[0]
    D = cfg["inner_dim"]
    nP = cfg["n_patches"]
    pLc = cfg["patch_len"] * cfg["c_in"]
    L = cfg["e_layers"]
    c_out = cfg["c_out"]

    Bn = B * nP                      # patch tokens per modality stream
    P = ((B + 7) // 8) * 8           # cls rows padded to a sublane multiple (aligned slices)
    split = P + Bn                   # rows [0:split] -> eeg expert, rows [split:] -> emg expert
    T = P + 2 * Bn                   # total token-slab rows

    # ---- layout glue (pure data movement) ----
    xp = jnp.transpose(x, (1, 0, 2)).reshape(2 * Bn, pLc)        # eeg rows then emg rows
    pos = jnp.tile(params["pos_embedding"][0, :nP], (B, 1))      # (B*nP, D)
    # TODO(synk): if the reference reserves pos row 0 for the cls token this is off by one
    # (LinearPatchEncoder2 / MultiPathBlock sources not provided).
    cls = params["cls_token"].reshape(1, D)

    # Additive block-diagonal attention masks, built once (one per stage).
    r = jnp.arange(T)
    in_eeg = (r >= P) & (r < split)
    in_emg = r >= split
    b_eeg = (r - P) // nP
    b_emg = (r - split) // nP
    seq_mono = jnp.where(in_eeg, P + b_eeg,
                jnp.where(in_emg, P + B + b_emg, r))             # each (batch,stream) separate
    seq_cross = jnp.where(r < B, r,
                 jnp.where(in_eeg, b_eeg,
                  jnp.where(in_emg, b_emg, T + r)))              # cls+eeg+emg per batch; pad alone

    def _mk(seq):
        return jnp.where(seq[:, None] == seq[None, :], 0.0, -1e30).astype(jnp.float32)

    masks = jnp.stack([_mk(seq_mono), _mk(seq_cross)], axis=0)   # (2, T, T)

    blk = params["blocks"]

    def _w_spec(arr):
        rest = tuple(int(d) for d in arr.shape[1:])
        zeros = (0,) * len(rest)
        return pl.BlockSpec((None,) + rest,
                            lambda s, l, _z=zeros, _L=L: (s * _L + l,) + _z)

    in_specs = [
        pl.BlockSpec((2 * Bn, pLc), lambda s, l: (0, 0)),         # patches (both streams)
        pl.BlockSpec((2, pLc, D), lambda s, l: (0, 0, 0)),        # patch-encoder weights
        pl.BlockSpec((2, 1, D), lambda s, l: (0, 0, 0)),          # patch-encoder biases
        pl.BlockSpec((Bn, D), lambda s, l: (0, 0)),               # positional embedding (tiled)
        pl.BlockSpec((1, D), lambda s, l: (0, 0)),                # cls token
        pl.BlockSpec((None, T, T), lambda s, l: (s, 0, 0)),       # per-stage additive mask
    ] + [_w_spec(blk[k]) for k in _BLOCK_KEYS] + [
        pl.BlockSpec((D, D), lambda s, l: (0, 0)),                # pooler W
        pl.BlockSpec((1, D), lambda s, l: (0, 0)),                # pooler b
        pl.BlockSpec((D, c_out), lambda s, l: (0, 0)),            # head W
        pl.BlockSpec((1, c_out), lambda s, l: (0, 0)),            # head b
    ]

    kernel = functools.partial(
        _fused_kernel, n_heads=cfg["n_heads"], d_head=cfg["d_head"],
        n_cls=B, n_pad=P, split=split, eps=1e-5)

    out, cls_emb = pl.pallas_call(
        kernel,
        grid=(2, L),                  # (stage, layer): fully sequential (activation carry)
        in_specs=in_specs,
        out_specs=(pl.BlockSpec((B, c_out), lambda s, l: (0, 0)),
                   pl.BlockSpec((B, D), lambda s, l: (0, 0))),
        out_shape=(jax.ShapeDtypeStruct((B, c_out), jnp.float32),
                   jax.ShapeDtypeStruct((B, D), jnp.float32)),
        scratch_shapes=[pltpu.VMEM((T, D), jnp.float32),          # resident activation slab
                        pltpu.VMEM((T, D), jnp.float32)],         # per-layer attention context
        compiler_params=pltpu.CompilerParams(
            dimension_semantics=("arbitrary", "arbitrary"),
            vmem_limit_bytes=48 * 1024 * 1024),
    )(xp, params["patch_w"], params["patch_b"], pos, cls, masks,
      *[blk[k] for k in _BLOCK_KEYS],
      params["pooler_w"], params["pooler_b"], params["head_w"], params["head_b"])

    return out, None, None, cls_emb, label


# ----------------------------------------------------------------------------
# Deterministic parameter init (stacked per-(stage,layer) weights, bf16 matmul weights)
# ----------------------------------------------------------------------------
def init_block_stacks(key, cfg):
    D = cfg["inner_dim"]
    Hd = cfg["mult_ff"] * D
    S = 2 * cfg["e_layers"]           # rows [0:L] = mono blocks, [L:2L] = cross blocks
    scale = 1.0 / math.sqrt(cfg["d_head"])
    ks = jax.random.split(key, 8)
    bf16 = jnp.bfloat16

    def nrm(k, shape):
        return jax.random.normal(k, shape, jnp.float32) * 0.02

    wq = nrm(ks[0], (S, D, D)) * scale          # fold softmax scale into the Q projection
    wqkv = jnp.concatenate([wq, nrm(ks[1], (S, D, D)), nrm(ks[2], (S, D, D))], axis=-1)

    return dict(
        ln1_g=jnp.ones((S, 1, D), jnp.float32), ln1_b=jnp.zeros((S, 1, D), jnp.float32),
        wqkv=wqkv.astype(bf16), bqkv=jnp.zeros((S, 1, 3 * D), jnp.float32),
        wo=nrm(ks[3], (S, D, D)).astype(bf16), bo=jnp.zeros((S, 1, D), jnp.float32),
        ln2_g=jnp.ones((S, 1, D), jnp.float32), ln2_b=jnp.zeros((S, 1, D), jnp.float32),
        we1=nrm(ks[4], (S, D, Hd)).astype(bf16), be1=jnp.zeros((S, 1, Hd), jnp.float32),
        we2=nrm(ks[5], (S, Hd, D)).astype(bf16), be2=jnp.zeros((S, 1, D), jnp.float32),
        wm1=nrm(ks[6], (S, D, Hd)).astype(bf16), bm1=jnp.zeros((S, 1, Hd), jnp.float32),
        wm2=nrm(ks[7], (S, Hd, D)).astype(bf16), bm2=jnp.zeros((S, 1, D), jnp.float32),
    )


def init_params(key, cfg):
    D = cfg["inner_dim"]
    keys = jax.random.split(key, 6)
    bf16 = jnp.bfloat16

    def nrm(k, shape):
        return jax.random.normal(k, shape, jnp.float32) * 0.02

    return dict(
        pos_embedding=jax.random.normal(keys[0], (1, cfg["n_patches"] + 1, D), jnp.float32),
        cls_token=jax.random.normal(keys[1], (1, 1, D), jnp.float32),
        patch_w=nrm(keys[2], (cfg["n_traces"], cfg["patch_len"] * cfg["c_in"], D)).astype(bf16),
        patch_b=jnp.zeros((cfg["n_traces"], 1, D), jnp.float32),
        blocks=init_block_stacks(keys[3], cfg),
        pooler_w=nrm(keys[4], (D, D)).astype(bf16),
        pooler_b=jnp.zeros((1, D), jnp.float32),
        head_w=nrm(keys[5], (D, cfg["c_out"])).astype(bf16),
        head_b=jnp.zeros((1, cfg["c_out"]), jnp.float32),
    )


# ----------------------------------------------------------------------------
if __name__ == "__main__":
    # Small config consistent with Model.__init__
    cfg = dict(
        c_in=1,
        c_out=5,
        d_model=32,
        n_heads=4,
        seq_len=16,
        patch_len=4,
        e_layers=2,
        d_ff=64,
        features="ALL",
    )
    cfg["d_head"] = cfg["d_model"] // cfg["n_heads"]
    cfg["inner_dim"] = cfg["n_heads"] * cfg["d_head"]
    cfg["mult_ff"] = cfg["d_ff"] // cfg["d_model"]
    cfg["n_traces"] = 2 if cfg["features"] == "ALL" else 1
    assert cfg["seq_len"] % cfg["patch_len"] == 0
    cfg["n_patches"] = cfg["seq_len"] // cfg["patch_len"]
    assert cfg["n_traces"] == 2  # forward unpacks (eeg, emg), as in the reference

    key = jax.random.PRNGKey(0)
    kp, kx, kl = jax.random.split(key, 3)
    params = init_params(kp, cfg)

    B = 2
    x = jax.random.normal(kx, (B, cfg["n_traces"], cfg["seq_len"]), jnp.float32)
    label = jax.random.randint(kl, (B,), 0, cfg["c_out"], jnp.int32)

    fwd = jax.jit(lambda p, xx, ll: model_forward(p, xx, ll, cfg))
    out, _a, _b, cls_emb, lab = fwd(params, x, label)
    jax.block_until_ready((out, cls_emb, lab))

    assert out.shape == (B, cfg["c_out"])
    assert cls_emb.shape == (B, cfg["inner_dim"])
    assert bool(jnp.all(jnp.isfinite(out)))
    assert bool(jnp.all(jnp.isfinite(cls_emb)))
    print("KERNEL_OK")
</pallas_src>

<mosaic_0001>
module attributes {stable_mosaic.version = 11 : i64} {
  func.func @_fused_kernel(%arg0: i32, %arg1: i32, %arg2: memref<16x4xf32, #tpu.memory_space<vmem>>, %arg3: memref<2x4x32xbf16, #tpu.memory_space<vmem>>, %arg4: memref<2x1x32xf32, #tpu.memory_space<vmem>>, %arg5: memref<8x32xf32, #tpu.memory_space<vmem>>, %arg6: memref<1x32xf32, #tpu.memory_space<vmem>>, %arg7: memref<1x24x24xf32, #tpu.memory_space<vmem>>, %arg8: memref<1x1x32xf32, #tpu.memory_space<vmem>>, %arg9: memref<1x1x32xf32, #tpu.memory_space<vmem>>, %arg10: memref<1x32x96xbf16, #tpu.memory_space<vmem>>, %arg11: memref<1x1x96xf32, #tpu.memory_space<vmem>>, %arg12: memref<1x32x32xbf16, #tpu.memory_space<vmem>>, %arg13: memref<1x1x32xf32, #tpu.memory_space<vmem>>, %arg14: memref<1x1x32xf32, #tpu.memory_space<vmem>>, %arg15: memref<1x1x32xf32, #tpu.memory_space<vmem>>, %arg16: memref<1x32x64xbf16, #tpu.memory_space<vmem>>, %arg17: memref<1x1x64xf32, #tpu.memory_space<vmem>>, %arg18: memref<1x64x32xbf16, #tpu.memory_space<vmem>>, %arg19: memref<1x1x32xf32, #tpu.memory_space<vmem>>, %arg20: memref<1x32x64xbf16, #tpu.memory_space<vmem>>, %arg21: memref<1x1x64xf32, #tpu.memory_space<vmem>>, %arg22: memref<1x64x32xbf16, #tpu.memory_space<vmem>>, %arg23: memref<1x1x32xf32, #tpu.memory_space<vmem>>, %arg24: memref<32x32xbf16, #tpu.memory_space<vmem>>, %arg25: memref<1x32xf32, #tpu.memory_space<vmem>>, %arg26: memref<32x5xbf16, #tpu.memory_space<vmem>>, %arg27: memref<1x5xf32, #tpu.memory_space<vmem>>, %arg28: memref<2x5xf32, #tpu.memory_space<vmem>>, %arg29: memref<2x32xf32, #tpu.memory_space<vmem>>, %arg30: memref<24x32xf32, #tpu.memory_space<vmem>>, %arg31: memref<24x32xf32, #tpu.memory_space<vmem>>) attributes {dimension_semantics = [#tpu.dimension_semantics<arbitrary>, #tpu.dimension_semantics<arbitrary>], iteration_bounds = array<i64: 2, 2>, scalar_prefetch = 0 : i64, scratch_operands = 2 : i64, tpu.core_type = #tpu.core_type<tc>, window_params = [{pipeline_mode = #tpu.pipeline_mode<synchronous>, transform_indices = @transform_0, window_bounds = array<i64: 16, 4>}, {pipeline_mode = #tpu.pipeline_mode<synchronous>, transform_indices = @transform_1, window_bounds = array<i64: 2, 4, 32>}, {pipeline_mode = #tpu.pipeline_mode<synchronous>, transform_indices = @transform_2, window_bounds = array<i64: 2, 1, 32>}, {pipeline_mode = #tpu.pipeline_mode<synchronous>, transform_indices = @transform_3, window_bounds = array<i64: 8, 32>}, {pipeline_mode = #tpu.pipeline_mode<synchronous>, transform_indices = @transform_4, window_bounds = array<i64: 1, 32>}, {transform_indices = @transform_5, window_bounds = array<i64: 1, 24, 24>}, {transform_indices = @transform_6, window_bounds = array<i64: 1, 1, 32>}, {transform_indices = @transform_7, window_bounds = array<i64: 1, 1, 32>}, {transform_indices = @transform_8, window_bounds = array<i64: 1, 32, 96>}, {transform_indices = @transform_9, window_bounds = array<i64: 1, 1, 96>}, {transform_indices = @transform_10, window_bounds = array<i64: 1, 32, 32>}, {transform_indices = @transform_11, window_bounds = array<i64: 1, 1, 32>}, {transform_indices = @transform_12, window_bounds = array<i64: 1, 1, 32>}, {transform_indices = @transform_13, window_bounds = array<i64: 1, 1, 32>}, {transform_indices = @transform_14, window_bounds = array<i64: 1, 32, 64>}, {transform_indices = @transform_15, window_bounds = array<i64: 1, 1, 64>}, {transform_indices = @transform_16, window_bounds = array<i64: 1, 64, 32>}, {transform_indices = @transform_17, window_bounds = array<i64: 1, 1, 32>}, {transform_indices = @transform_18, window_bounds = array<i64: 1, 32, 64>}, {transform_indices = @transform_19, window_bounds = array<i64: 1, 1, 64>}, {transform_indices = @transform_20, window_bounds = array<i64: 1, 64, 32>}, {transform_indices = @transform_21, window_bounds = array<i64: 1, 1, 32>}, {pipeline_mode = #tpu.pipeline_mode<synchronous>, transform_indices = @transform_22, window_bounds = array<i64: 32, 32>}, {pipeline_mode = #tpu.pipeline_mode<synchronous>, transform_indices = @transform_23, window_bounds = array<i64: 1, 32>}, {pipeline_mode = #tpu.pipeline_mode<synchronous>, transform_indices = @transform_24, window_bounds = array<i64: 32, 5>}, {pipeline_mode = #tpu.pipeline_mode<synchronous>, transform_indices = @transform_25, window_bounds = array<i64: 1, 5>}, {pipeline_mode = #tpu.pipeline_mode<synchronous>, transform_indices = @transform_26, window_bounds = array<i64: 2, 5>}, {pipeline_mode = #tpu.pipeline_mode<synchronous>, transform_indices = @transform_27, window_bounds = array<i64: 2, 32>}]} {
    %c0_i32 = arith.constant 0 : i32
    %0 = arith.cmpi eq, %arg0, %c0_i32 : i32
    %c0_i32_0 = arith.constant 0 : i32
    %1 = arith.cmpi eq, %arg1, %c0_i32_0 : i32
    %2 = arith.andi %0, %1 : i1
    %3 = arith.extui %2 : i1 to i32
    %c0_i32_1 = arith.constant 0 : i32
    %4 = arith.cmpi ne, %3, %c0_i32_1 : i32
    scf.if %4 {
      %c0_107 = arith.constant 0 : index
      %c0_108 = arith.constant 0 : index
      %243 = vector.load %arg5[%c0_107, %c0_108] : memref<8x32xf32, #tpu.memory_space<vmem>>, vector<8x32xf32>
      %c0_109 = arith.constant 0 : index
      %c0_110 = arith.constant 0 : index
      %244 = vector.load %arg2[%c0_109, %c0_110] : memref<16x4xf32, #tpu.memory_space<vmem>>, vector<8x4xf32>
      %245 = arith.truncf %244 : vector<8x4xf32> to vector<8x4xbf16>
      %c0_111 = arith.constant 0 : index
      %c0_112 = arith.constant 0 : index
      %c0_113 = arith.constant 0 : index
      %246 = vector.load %arg3[%c0_111, %c0_112, %c0_113] : memref<2x4x32xbf16, #tpu.memory_space<vmem>>, vector<1x4x32xbf16>
      %247 = vector.shape_cast %246 : vector<1x4x32xbf16> to vector<4x32xbf16>
      %cst_114 = arith.constant dense<0.000000e+00> : vector<8x32xf32>
      %248 = tpu.matmul %245, %247, %cst_114 {dimension_numbers = #tpu.dot_dimension_numbers<[1], [0], [0], [1], [0, 0, 1, 1], [], []>} : vector<8x4xbf16>, vector<4x32xbf16>, vector<8x32xf32> -> vector<8x32xf32>
      %c0_115 = arith.constant 0 : index
      %c0_116 = arith.constant 0 : index
      %c0_117 = arith.constant 0 : index
      %249 = vector.load %arg4[%c0_115, %c0_116, %c0_117] : memref<2x1x32xf32, #tpu.memory_space<vmem>>, vector<1x1x32xf32>
      %250 = vector.shape_cast %249 : vector<1x1x32xf32> to vector<1x32xf32>
      %251 = vector.broadcast %250 : vector<1x32xf32> to vector<8x32xf32>
      %252 = arith.addf %248, %251 : vector<8x32xf32>
      %253 = arith.addf %252, %243 : vector<8x32xf32>
      %c8_118 = arith.constant 8 : index
      %c0_119 = arith.constant 0 : index
      %254 = vector.load %arg2[%c8_118, %c0_119] : memref<16x4xf32, #tpu.memory_space<vmem>>, vector<8x4xf32>
      %255 = arith.truncf %254 : vector<8x4xf32> to vector<8x4xbf16>
      %c1 = arith.constant 1 : index
      %c0_120 = arith.constant 0 : index
      %c0_121 = arith.constant 0 : index
      %256 = vector.load %arg3[%c1, %c0_120, %c0_121] : memref<2x4x32xbf16, #tpu.memory_space<vmem>>, vector<1x4x32xbf16>
      %257 = vector.shape_cast %256 : vector<1x4x32xbf16> to vector<4x32xbf16>
      %cst_122 = arith.constant dense<0.000000e+00> : vector<8x32xf32>
      %258 = tpu.matmul %255, %257, %cst_122 {dimension_numbers = #tpu.dot_dimension_numbers<[1], [0], [0], [1], [0, 0, 1, 1], [], []>} : vector<8x4xbf16>, vector<4x32xbf16>, vector<8x32xf32> -> vector<8x32xf32>
      %c1_123 = arith.constant 1 : index
      %c0_124 = arith.constant 0 : index
      %c0_125 = arith.constant 0 : index
      %259 = vector.load %arg4[%c1_123, %c0_124, %c0_125] : memref<2x1x32xf32, #tpu.memory_space<vmem>>, vector<1x1x32xf32>
      %260 = vector.shape_cast %259 : vector<1x1x32xf32> to vector<1x32xf32>
      %261 = vector.broadcast %260 : vector<1x32xf32> to vector<8x32xf32>
      %262 = arith.addf %258, %261 : vector<8x32xf32>
      %263 = arith.addf %262, %243 : vector<8x32xf32>
      %c0_126 = arith.constant 0 : index
      %c0_127 = arith.constant 0 : index
      %264 = vector.load %arg6[%c0_126, %c0_127] : memref<1x32xf32, #tpu.memory_space<vmem>>, vector<1x32xf32>
      %265 = vector.shape_cast %264 : vector<1x32xf32> to vector<1x32xf32>
      %266 = vector.broadcast %265 : vector<1x32xf32> to vector<8x32xf32>
      %c0_128 = arith.constant 0 : index
      %c0_129 = arith.constant 0 : index
      %267 = vector.load %arg30[%c0_128, %c0_129] : memref<24x32xf32, #tpu.memory_space<vmem>>, vector<8x32xf32>
      tpu.vector_store %arg30[%c0_128, %c0_129], %266 {strides = array<i32>} : memref<24x32xf32, #tpu.memory_space<vmem>>, vector<8x32xf32>,
      %c8_130 = arith.constant 8 : index
      %c0_131 = arith.constant 0 : index
      %268 = vector.load %arg30[%c8_130, %c0_131] : memref<24x32xf32, #tpu.memory_space<vmem>>, vector<8x32xf32>
      tpu.vector_store %arg30[%c8_130, %c0_131], %253 {strides = array<i32>} : memref<24x32xf32, #tpu.memory_space<vmem>>, vector<8x32xf32>,
      %c16_132 = arith.constant 16 : index
      %c0_133 = arith.constant 0 : index
      %269 = vector.load %arg30[%c16_132, %c0_133] : memref<24x32xf32, #tpu.memory_space<vmem>>, vector<8x32xf32>
      tpu.vector_store %arg30[%c16_132, %c0_133], %263 {strides = array<i32>} : memref<24x32xf32, #tpu.memory_space<vmem>>, vector<8x32xf32>,
    } else {
    }
    %c0 = arith.constant 0 : index
    %c0_2 = arith.constant 0 : index
    %5 = vector.load %arg30[%c0, %c0_2] : memref<24x32xf32, #tpu.memory_space<vmem>>, vector<24x32xf32>
    %c0_3 = arith.constant 0 : index
    %c0_4 = arith.constant 0 : index
    %c0_5 = arith.constant 0 : index
    %6 = vector.load %arg8[%c0_3, %c0_4, %c0_5] : memref<1x1x32xf32, #tpu.memory_space<vmem>>, vector<1x1x32xf32>
    %7 = vector.shape_cast %6 : vector<1x1x32xf32> to vector<1x32xf32>
    %c0_6 = arith.constant 0 : index
    %c0_7 = arith.constant 0 : index
    %c0_8 = arith.constant 0 : index
    %8 = vector.load %arg9[%c0_6, %c0_7, %c0_8] : memref<1x1x32xf32, #tpu.memory_space<vmem>>, vector<1x1x32xf32>
    %9 = vector.shape_cast %8 : vector<1x1x32xf32> to vector<1x32xf32>
    %cst = arith.constant dense<0.000000e+00> : vector<24xf32>
    %10 = vector.multi_reduction <add>, %5, %cst [1] : vector<24x32xf32> to vector<24xf32>
    %11 = vector.shape_cast %10 : vector<24xf32> to vector<24x1xf32>
    %cst_9 = arith.constant 3.200000e+01 : f32
    %12 = vector.broadcast %cst_9 : f32 to vector<24x1xf32>
    %13 = arith.divf %11, %12 : vector<24x1xf32>
    %14 = vector.broadcast %13 : vector<24x1xf32> to vector<24x32xf32>
    %15 = arith.subf %5, %14 : vector<24x32xf32>
    %16 = arith.mulf %15, %15 : vector<24x32xf32>
    %cst_10 = arith.constant dense<0.000000e+00> : vector<24xf32>
    %17 = vector.multi_reduction <add>, %16, %cst_10 [1] : vector<24x32xf32> to vector<24xf32>
    %18 = vector.shape_cast %17 : vector<24xf32> to vector<24x1xf32>
    %cst_11 = arith.constant 3.200000e+01 : f32
    %19 = vector.broadcast %cst_11 : f32 to vector<24x1xf32>
    %20 = arith.divf %18, %19 : vector<24x1xf32>
    %21 = vector.broadcast %13 : vector<24x1xf32> to vector<24x32xf32>
    %22 = arith.subf %5, %21 : vector<24x32xf32>
    %cst_12 = arith.constant 9.99999974E-6 : f32
    %23 = vector.broadcast %cst_12 : f32 to vector<24x1xf32>
    %24 = arith.addf %20, %23 : vector<24x1xf32>
    %25 = math.rsqrt %24 : vector<24x1xf32>
    %26 = vector.broadcast %25 : vector<24x1xf32> to vector<24x32xf32>
    %27 = arith.mulf %22, %26 : vector<24x32xf32>
    %28 = vector.broadcast %7 : vector<1x32xf32> to vector<24x32xf32>
    %29 = arith.mulf %27, %28 : vector<24x32xf32>
    %30 = vector.broadcast %9 : vector<1x32xf32> to vector<24x32xf32>
    %31 = arith.addf %29, %30 : vector<24x32xf32>
    %32 = arith.truncf %31 : vector<24x32xf32> to vector<24x32xbf16>
    %c0_13 = arith.constant 0 : index
    %c0_14 = arith.constant 0 : index
    %c0_15 = arith.constant 0 : index
    %33 = vector.load %arg10[%c0_13, %c0_14, %c0_15] : memref<1x32x96xbf16, #tpu.memory_space<vmem>>, vector<1x32x96xbf16>
    %34 = vector.shape_cast %33 : vector<1x32x96xbf16> to vector<32x96xbf16>
    %cst_16 = arith.constant dense<0.000000e+00> : vector<24x96xf32>
    %35 = tpu.matmul %32, %34, %cst_16 {dimension_numbers = #tpu.dot_dimension_numbers<[1], [0], [0], [1], [0, 0, 1, 1], [], []>} : vector<24x32xbf16>, vector<32x96xbf16>, vector<24x96xf32> -> vector<24x96xf32>
    %c0_17 = arith.constant 0 : index
    %c0_18 = arith.constant 0 : index
    %c0_19 = arith.constant 0 : index
    %36 = vector.load %arg11[%c0_17, %c0_18, %c0_19] : memref<1x1x96xf32, #tpu.memory_space<vmem>>, vector<1x1x96xf32>
    %37 = vector.shape_cast %36 : vector<1x1x96xf32> to vector<1x96xf32>
    %38 = vector.broadcast %37 : vector<1x96xf32> to vector<24x96xf32>
    %39 = arith.addf %35, %38 : vector<24x96xf32>
    %c0_20 = arith.constant 0 : index
    %c0_21 = arith.constant 0 : index
    %c0_22 = arith.constant 0 : index
    %40 = vector.load %arg7[%c0_20, %c0_21, %c0_22] : memref<1x24x24xf32, #tpu.memory_space<vmem>>, vector<1x24x24xf32>
    %41 = vector.shape_cast %40 : vector<1x24x24xf32> to vector<24x24xf32>
    %42 = vector.extract_strided_slice %39 {offsets = [0, 0], sizes = [24, 8], strides = [1, 1]} : vector<24x96xf32> to vector<24x8xf32>
    %43 = arith.truncf %42 : vector<24x8xf32> to vector<24x8xbf16>
    %44 = vector.extract_strided_slice %39 {offsets = [0, 32], sizes = [24, 8], strides = [1, 1]} : vector<24x96xf32> to vector<24x8xf32>
    %45 = arith.truncf %44 : vector<24x8xf32> to vector<24x8xbf16>
    %46 = vector.extract_strided_slice %39 {offsets = [0, 64], sizes = [24, 8], strides = [1, 1]} : vector<24x96xf32> to vector<24x8xf32>
    %47 = arith.truncf %46 : vector<24x8xf32> to vector<24x8xbf16>
    %cst_23 = arith.constant dense<0.000000e+00> : vector<24x24xf32>
    %48 = tpu.matmul %43, %45, %cst_23 {dimension_numbers = #tpu.dot_dimension_numbers<[1], [1], [0], [0], [0, 0, 1, 0], [], []>} : vector<24x8xbf16>, vector<24x8xbf16>, vector<24x24xf32> -> vector<24x24xf32>
    %49 = arith.addf %48, %41 : vector<24x24xf32>
    %cst_24 = arith.constant dense<0xFF800000> : vector<24xf32>
    %50 = vector.multi_reduction <maximumf>, %49, %cst_24 [1] : vector<24x24xf32> to vector<24xf32>
    %51 = vector.shape_cast %50 : vector<24xf32> to vector<24x1xf32>
    %52 = vector.broadcast %51 : vector<24x1xf32> to vector<24x24xf32>
    %53 = arith.subf %49, %52 : vector<24x24xf32>
    %54 = math.exp %53 : vector<24x24xf32>
    %cst_25 = arith.constant dense<0.000000e+00> : vector<24xf32>
    %55 = vector.multi_reduction <add>, %54, %cst_25 [1] : vector<24x24xf32> to vector<24xf32>
    %56 = vector.shape_cast %55 : vector<24xf32> to vector<24x1xf32>
    %57 = tpu.reciprocal %56 {approx = true} : vector<24x1xf32> -> vector<24x1xf32>
    %58 = vector.broadcast %57 : vector<24x1xf32> to vector<24x24xf32>
    %59 = arith.mulf %54, %58 : vector<24x24xf32>
    %60 = arith.truncf %59 : vector<24x24xf32> to vector<24x24xbf16>
    %cst_26 = arith.constant dense<0.000000e+00> : vector<24x8xf32>
    %61 = tpu.matmul %60, %47, %cst_26 {dimension_numbers = #tpu.dot_dimension_numbers<[1], [0], [0], [1], [0, 0, 1, 1], [], []>} : vector<24x24xbf16>, vector<24x8xbf16>, vector<24x8xf32> -> vector<24x8xf32>
    %c0_27 = arith.constant 0 : index
    %c0_28 = arith.constant 0 : index
    %62 = vector.load %arg31[%c0_27, %c0_28] : memref<24x32xf32, #tpu.memory_space<vmem>>, vector<24x8xf32>
    tpu.vector_store %arg31[%c0_27, %c0_28], %61 {strides = array<i32>} : memref<24x32xf32, #tpu.memory_space<vmem>>, vector<24x8xf32>,
    %63 = vector.extract_strided_slice %39 {offsets = [0, 8], sizes = [24, 8], strides = [1, 1]} : vector<24x96xf32> to vector<24x8xf32>
    %64 = arith.truncf %63 : vector<24x8xf32> to vector<24x8xbf16>
    %65 = vector.extract_strided_slice %39 {offsets = [0, 40], sizes = [24, 8], strides = [1, 1]} : vector<24x96xf32> to vector<24x8xf32>
    %66 = arith.truncf %65 : vector<24x8xf32> to vector<24x8xbf16>
    %67 = vector.extract_strided_slice %39 {offsets = [0, 72], sizes = [24, 8], strides = [1, 1]} : vector<24x96xf32> to vector<24x8xf32>
    %68 = arith.truncf %67 : vector<24x8xf32> to vector<24x8xbf16>
    %cst_29 = arith.constant dense<0.000000e+00> : vector<24x24xf32>
    %69 = tpu.matmul %64, %66, %cst_29 {dimension_numbers = #tpu.dot_dimension_numbers<[1], [1], [0], [0], [0, 0, 1, 0], [], []>} : vector<24x8xbf16>, vector<24x8xbf16>, vector<24x24xf32> -> vector<24x24xf32>
    %70 = arith.addf %69, %41 : vector<24x24xf32>
    %cst_30 = arith.constant dense<0xFF800000> : vector<24xf32>
    %71 = vector.multi_reduction <maximumf>, %70, %cst_30 [1] : vector<24x24xf32> to vector<24xf32>
    %72 = vector.shape_cast %71 : vector<24xf32> to vector<24x1xf32>
    %73 = vector.broadcast %72 : vector<24x1xf32> to vector<24x24xf32>
    %74 = arith.subf %70, %73 : vector<24x24xf32>
    %75 = math.exp %74 : vector<24x24xf32>
    %cst_31 = arith.constant dense<0.000000e+00> : vector<24xf32>
    %76 = vector.multi_reduction <add>, %75, %cst_31 [1] : vector<24x24xf32> to vector<24xf32>
    %77 = vector.shape_cast %76 : vector<24xf32> to vector<24x1xf32>
    %78 = tpu.reciprocal %77 {approx = true} : vector<24x1xf32> -> vector<24x1xf32>
    %79 = vector.broadcast %78 : vector<24x1xf32> to vector<24x24xf32>
    %80 = arith.mulf %75, %79 : vector<24x24xf32>
    %81 = arith.truncf %80 : vector<24x24xf32> to vector<24x24xbf16>
    %cst_32 = arith.constant dense<0.000000e+00> : vector<24x8xf32>
    %82 = tpu.matmul %81, %68, %cst_32 {dimension_numbers = #tpu.dot_dimension_numbers<[1], [0], [0], [1], [0, 0, 1, 1], [], []>} : vector<24x24xbf16>, vector<24x8xbf16>, vector<24x8xf32> -> vector<24x8xf32>
    %c0_33 = arith.constant 0 : index
    %c8 = arith.constant 8 : index
    %83 = vector.load %arg31[%c0_33, %c8] : memref<24x32xf32, #tpu.memory_space<vmem>>, vector<24x8xf32>
    tpu.vector_store %arg31[%c0_33, %c8], %82 {strides = array<i32>} : memref<24x32xf32, #tpu.memory_space<vmem>>, vector<24x8xf32>,
    %84 = vector.extract_strided_slice %39 {offsets = [0, 16], sizes = [24, 8], strides = [1, 1]} : vector<24x96xf32> to vector<24x8xf32>
    %85 = arith.truncf %84 : vector<24x8xf32> to vector<24x8xbf16>
    %86 = vector.extract_strided_slice %39 {offsets = [0, 48], sizes = [24, 8], strides = [1, 1]} : vector<24x96xf32> to vector<24x8xf32>
    %87 = arith.truncf %86 : vector<24x8xf32> to vector<24x8xbf16>
    %88 = vector.extract_strided_slice %39 {offsets = [0, 80], sizes = [24, 8], strides = [1, 1]} : vector<24x96xf32> to vector<24x8xf32>
    %89 = arith.truncf %88 : vector<24x8xf32> to vector<24x8xbf16>
    %cst_34 = arith.constant dense<0.000000e+00> : vector<24x24xf32>
    %90 = tpu.matmul %85, %87, %cst_34 {dimension_numbers = #tpu.dot_dimension_numbers<[1], [1], [0], [0], [0, 0, 1, 0], [], []>} : vector<24x8xbf16>, vector<24x8xbf16>, vector<24x24xf32> -> vector<24x24xf32>
    %91 = arith.addf %90, %41 : vector<24x24xf32>
    %cst_35 = arith.constant dense<0xFF800000> : vector<24xf32>
    %92 = vector.multi_reduction <maximumf>, %91, %cst_35 [1] : vector<24x24xf32> to vector<24xf32>
    %93 = vector.shape_cast %92 : vector<24xf32> to vector<24x1xf32>
    %94 = vector.broadcast %93 : vector<24x1xf32> to vector<24x24xf32>
    %95 = arith.subf %91, %94 : vector<24x24xf32>
    %96 = math.exp %95 : vector<24x24xf32>
    %cst_36 = arith.constant dense<0.000000e+00> : vector<24xf32>
    %97 = vector.multi_reduction <add>, %96, %cst_36 [1] : vector<24x24xf32> to vector<24xf32>
    %98 = vector.shape_cast %97 : vector<24xf32> to vector<24x1xf32>
    %99 = tpu.reciprocal %98 {approx = true} : vector<24x1xf32> -> vector<24x1xf32>
    %100 = vector.broadcast %99 : vector<24x1xf32> to vector<24x24xf32>
    %101 = arith.mulf %96, %100 : vector<24x24xf32>
    %102 = arith.truncf %101 : vector<24x24xf32> to vector<24x24xbf16>
    %cst_37 = arith.constant dense<0.000000e+00> : vector<24x8xf32>
    %103 = tpu.matmul %102, %89, %cst_37 {dimension_numbers = #tpu.dot_dimension_numbers<[1], [0], [0], [1], [0, 0, 1, 1], [], []>} : vector<24x24xbf16>, vector<24x8xbf16>, vector<24x8xf32> -> vector<24x8xf32>
    %c0_38 = arith.constant 0 : index
    %c16 = arith.constant 16 : index
    %104 = vector.load %arg31[%c0_38, %c16] : memref<24x32xf32, #tpu.memory_space<vmem>>, vector<24x8xf32>
    tpu.vector_store %arg31[%c0_38, %c16], %103 {strides = array<i32>} : memref<24x32xf32, #tpu.memory_space<vmem>>, vector<24x8xf32>,
    %105 = vector.extract_strided_slice %39 {offsets = [0, 24], sizes = [24, 8], strides = [1, 1]} : vector<24x96xf32> to vector<24x8xf32>
    %106 = arith.truncf %105 : vector<24x8xf32> to vector<24x8xbf16>
    %107 = vector.extract_strided_slice %39 {offsets = [0, 56], sizes = [24, 8], strides = [1, 1]} : vector<24x96xf32> to vector<24x8xf32>
    %108 = arith.truncf %107 : vector<24x8xf32> to vector<24x8xbf16>
    %109 = vector.extract_strided_slice %39 {offsets = [0, 88], sizes = [24, 8], strides = [1, 1]} : vector<24x96xf32> to vector<24x8xf32>
    %110 = arith.truncf %109 : vector<24x8xf32> to vector<24x8xbf16>
    %cst_39 = arith.constant dense<0.000000e+00> : vector<24x24xf32>
    %111 = tpu.matmul %106, %108, %cst_39 {dimension_numbers = #tpu.dot_dimension_numbers<[1], [1], [0], [0], [0, 0, 1, 0], [], []>} : vector<24x8xbf16>, vector<24x8xbf16>, vector<24x24xf32> -> vector<24x24xf32>
    %112 = arith.addf %111, %41 : vector<24x24xf32>
    %cst_40 = arith.constant dense<0xFF800000> : vector<24xf32>
    %113 = vector.multi_reduction <maximumf>, %112, %cst_40 [1] : vector<24x24xf32> to vector<24xf32>
    %114 = vector.shape_cast %113 : vector<24xf32> to vector<24x1xf32>
    %115 = vector.broadcast %114 : vector<24x1xf32> to vector<24x24xf32>
    %116 = arith.subf %112, %115 : vector<24x24xf32>
    %117 = math.exp %116 : vector<24x24xf32>
    %cst_41 = arith.constant dense<0.000000e+00> : vector<24xf32>
    %118 = vector.multi_reduction <add>, %117, %cst_41 [1] : vector<24x24xf32> to vector<24xf32>
    %119 = vector.shape_cast %118 : vector<24xf32> to vector<24x1xf32>
    %120 = tpu.reciprocal %119 {approx = true} : vector<24x1xf32> -> vector<24x1xf32>
    %121 = vector.broadcast %120 : vector<24x1xf32> to vector<24x24xf32>
    %122 = arith.mulf %117, %121 : vector<24x24xf32>
    %123 = arith.truncf %122 : vector<24x24xf32> to vector<24x24xbf16>
    %cst_42 = arith.constant dense<0.000000e+00> : vector<24x8xf32>
    %124 = tpu.matmul %123, %110, %cst_42 {dimension_numbers = #tpu.dot_dimension_numbers<[1], [0], [0], [1], [0, 0, 1, 1], [], []>} : vector<24x24xbf16>, vector<24x8xbf16>, vector<24x8xf32> -> vector<24x8xf32>
    %c0_43 = arith.constant 0 : index
    %c24 = arith.constant 24 : index
    %125 = vector.load %arg31[%c0_43, %c24] : memref<24x32xf32, #tpu.memory_space<vmem>>, vector<24x8xf32>
    tpu.vector_store %arg31[%c0_43, %c24], %124 {strides = array<i32>} : memref<24x32xf32, #tpu.memory_space<vmem>>, vector<24x8xf32>,
    %c0_44 = arith.constant 0 : index
    %c0_45 = arith.constant 0 : index
    %126 = vector.load %arg31[%c0_44, %c0_45] : memref<24x32xf32, #tpu.memory_space<vmem>>, vector<24x32xf32>
    %127 = arith.truncf %126 : vector<24x32xf32> to vector<24x32xbf16>
    %c0_46 = arith.constant 0 : index
    %c0_47 = arith.constant 0 : index
    %c0_48 = arith.constant 0 : index
    %128 = vector.load %arg12[%c0_46, %c0_47, %c0_48] : memref<1x32x32xbf16, #tpu.memory_space<vmem>>, vector<1x32x32xbf16>
    %129 = vector.shape_cast %128 : vector<1x32x32xbf16> to vector<32x32xbf16>
    %cst_49 = arith.constant dense<0.000000e+00> : vector<24x32xf32>
    %130 = tpu.matmul %127, %129, %cst_49 {dimension_numbers = #tpu.dot_dimension_numbers<[1], [0], [0], [1], [0, 0, 1, 1], [], []>} : vector<24x32xbf16>, vector<32x32xbf16>, vector<24x32xf32> -> vector<24x32xf32>
    %131 = arith.addf %5, %130 : vector<24x32xf32>
    %c0_50 = arith.constant 0 : index
    %c0_51 = arith.constant 0 : index
    %c0_52 = arith.constant 0 : index
    %132 = vector.load %arg13[%c0_50, %c0_51, %c0_52] : memref<1x1x32xf32, #tpu.memory_space<vmem>>, vector<1x1x32xf32>
    %133 = vector.shape_cast %132 : vector<1x1x32xf32> to vector<1x32xf32>
    %134 = vector.broadcast %133 : vector<1x32xf32> to vector<24x32xf32>
    %135 = arith.addf %131, %134 : vector<24x32xf32>
    %c0_53 = arith.constant 0 : index
    %c0_54 = arith.constant 0 : index
    %c0_55 = arith.constant 0 : index
    %136 = vector.load %arg14[%c0_53, %c0_54, %c0_55] : memref<1x1x32xf32, #tpu.memory_space<vmem>>, vector<1x1x32xf32>
    %137 = vector.shape_cast %136 : vector<1x1x32xf32> to vector<1x32xf32>
    %c0_56 = arith.constant 0 : index
    %c0_57 = arith.constant 0 : index
    %c0_58 = arith.constant 0 : index
    %138 = vector.load %arg15[%c0_56, %c0_57, %c0_58] : memref<1x1x32xf32, #tpu.memory_space<vmem>>, vector<1x1x32xf32>
    %139 = vector.shape_cast %138 : vector<1x1x32xf32> to vector<1x32xf32>
    %cst_59 = arith.constant dense<0.000000e+00> : vector<24xf32>
    %140 = vector.multi_reduction <add>, %135, %cst_59 [1] : vector<24x32xf32> to vector<24xf32>
    %141 = vector.shape_cast %140 : vector<24xf32> to vector<24x1xf32>
    %cst_60 = arith.constant 3.200000e+01 : f32
    %142 = vector.broadcast %cst_60 : f32 to vector<24x1xf32>
    %143 = arith.divf %141, %142 : vector<24x1xf32>
    %144 = vector.broadcast %143 : vector<24x1xf32> to vector<24x32xf32>
    %145 = arith.subf %135, %144 : vector<24x32xf32>
    %146 = arith.mulf %145, %145 : vector<24x32xf32>
    %cst_61 = arith.constant dense<0.000000e+00> : vector<24xf32>
    %147 = vector.multi_reduction <add>, %146, %cst_61 [1] : vector<24x32xf32> to vector<24xf32>
    %148 = vector.shape_cast %147 : vector<24xf32> to vector<24x1xf32>
    %cst_62 = arith.constant 3.200000e+01 : f32
    %149 = vector.broadcast %cst_62 : f32 to vector<24x1xf32>
    %150 = arith.divf %148, %149 : vector<24x1xf32>
    %151 = vector.broadcast %143 : vector<24x1xf32> to vector<24x32xf32>
    %152 = arith.subf %135, %151 : vector<24x32xf32>
    %cst_63 = arith.constant 9.99999974E-6 : f32
    %153 = vector.broadcast %cst_63 : f32 to vector<24x1xf32>
    %154 = arith.addf %150, %153 : vector<24x1xf32>
    %155 = math.rsqrt %154 : vector<24x1xf32>
    %156 = vector.broadcast %155 : vector<24x1xf32> to vector<24x32xf32>
    %157 = arith.mulf %152, %156 : vector<24x32xf32>
    %158 = vector.broadcast %137 : vector<1x32xf32> to vector<24x32xf32>
    %159 = arith.mulf %157, %158 : vector<24x32xf32>
    %160 = vector.broadcast %139 : vector<1x32xf32> to vector<24x32xf32>
    %161 = arith.addf %159, %160 : vector<24x32xf32>
    %162 = vector.extract_strided_slice %161 {offsets = [0, 0], sizes = [16, 32], strides = [1, 1]} : vector<24x32xf32> to vector<16x32xf32>
    %163 = arith.truncf %162 : vector<16x32xf32> to vector<16x32xbf16>
    %c0_64 = arith.constant 0 : index
    %c0_65 = arith.constant 0 : index
    %c0_66 = arith.constant 0 : index
    %164 = vector.load %arg16[%c0_64, %c0_65, %c0_66] : memref<1x32x64xbf16, #tpu.memory_space<vmem>>, vector<1x32x64xbf16>
    %165 = vector.shape_cast %164 : vector<1x32x64xbf16> to vector<32x64xbf16>
    %cst_67 = arith.constant dense<0.000000e+00> : vector<16x64xf32>
    %166 = tpu.matmul %163, %165, %cst_67 {dimension_numbers = #tpu.dot_dimension_numbers<[1], [0], [0], [1], [0, 0, 1, 1], [], []>} : vector<16x32xbf16>, vector<32x64xbf16>, vector<16x64xf32> -> vector<16x64xf32>
    %c0_68 = arith.constant 0 : index
    %c0_69 = arith.constant 0 : index
    %c0_70 = arith.constant 0 : index
    %167 = vector.load %arg17[%c0_68, %c0_69, %c0_70] : memref<1x1x64xf32, #tpu.memory_space<vmem>>, vector<1x1x64xf32>
    %168 = vector.shape_cast %167 : vector<1x1x64xf32> to vector<1x64xf32>
    %169 = vector.broadcast %168 : vector<1x64xf32> to vector<16x64xf32>
    %170 = arith.addf %166, %169 : vector<16x64xf32>
    %171 = arith.mulf %170, %170 : vector<16x64xf32>
    %172 = arith.mulf %170, %171 : vector<16x64xf32>
    %cst_71 = arith.constant 4.471500e-02 : f32
    %173 = vector.broadcast %cst_71 : f32 to vector<16x64xf32>
    %174 = arith.mulf %173, %172 : vector<16x64xf32>
    %175 = arith.addf %170, %174 : vector<16x64xf32>
    %cst_72 = arith.constant 0.797884583 : f32
    %176 = vector.broadcast %cst_72 : f32 to vector<16x64xf32>
    %177 = arith.mulf %176, %175 : vector<16x64xf32>
    %178 = math.tanh %177 : vector<16x64xf32>
    %cst_73 = arith.constant 1.000000e+00 : f32
    %179 = vector.broadcast %cst_73 : f32 to vector<16x64xf32>
    %180 = arith.addf %179, %178 : vector<16x64xf32>
    %cst_74 = arith.constant 5.000000e-01 : f32
    %181 = vector.broadcast %cst_74 : f32 to vector<16x64xf32>
    %182 = arith.mulf %181, %180 : vector<16x64xf32>
    %183 = arith.mulf %170, %182 : vector<16x64xf32>
    %184 = arith.truncf %183 : vector<16x64xf32> to vector<16x64xbf16>
    %c0_75 = arith.constant 0 : index
    %c0_76 = arith.constant 0 : index
    %c0_77 = arith.constant 0 : index
    %185 = vector.load %arg18[%c0_75, %c0_76, %c0_77] : memref<1x64x32xbf16, #tpu.memory_space<vmem>>, vector<1x64x32xbf16>
    %186 = vector.shape_cast %185 : vector<1x64x32xbf16> to vector<64x32xbf16>
    %cst_78 = arith.constant dense<0.000000e+00> : vector<16x32xf32>
    %187 = tpu.matmul %184, %186, %cst_78 {dimension_numbers = #tpu.dot_dimension_numbers<[1], [0], [0], [1], [0, 0, 1, 1], [], []>} : vector<16x64xbf16>, vector<64x32xbf16>, vector<16x32xf32> -> vector<16x32xf32>
    %c0_79 = arith.constant 0 : index
    %c0_80 = arith.constant 0 : index
    %c0_81 = arith.constant 0 : index
    %188 = vector.load %arg19[%c0_79, %c0_80, %c0_81] : memref<1x1x32xf32, #tpu.memory_space<vmem>>, vector<1x1x32xf32>
    %189 = vector.shape_cast %188 : vector<1x1x32xf32> to vector<1x32xf32>
    %190 = vector.broadcast %189 : vector<1x32xf32> to vector<16x32xf32>
    %191 = arith.addf %187, %190 : vector<16x32xf32>
    %192 = vector.extract_strided_slice %161 {offsets = [16, 0], sizes = [8, 32], strides = [1, 1]} : vector<24x32xf32> to vector<8x32xf32>
    %193 = arith.truncf %192 : vector<8x32xf32> to vector<8x32xbf16>
    %c0_82 = arith.constant 0 : index
    %c0_83 = arith.constant 0 : index
    %c0_84 = arith.constant 0 : index
    %194 = vector.load %arg20[%c0_82, %c0_83, %c0_84] : memref<1x32x64xbf16, #tpu.memory_space<vmem>>, vector<1x32x64xbf16>
    %195 = vector.shape_cast %194 : vector<1x32x64xbf16> to vector<32x64xbf16>
    %cst_85 = arith.constant dense<0.000000e+00> : vector<8x64xf32>
    %196 = tpu.matmul %193, %195, %cst_85 {dimension_numbers = #tpu.dot_dimension_numbers<[1], [0], [0], [1], [0, 0, 1, 1], [], []>} : vector<8x32xbf16>, vector<32x64xbf16>, vector<8x64xf32> -> vector<8x64xf32>
    %c0_86 = arith.constant 0 : index
    %c0_87 = arith.constant 0 : index
    %c0_88 = arith.constant 0 : index
    %197 = vector.load %arg21[%c0_86, %c0_87, %c0_88] : memref<1x1x64xf32, #tpu.memory_space<vmem>>, vector<1x1x64xf32>
    %198 = vector.shape_cast %197 : vector<1x1x64xf32> to vector<1x64xf32>
    %199 = vector.broadcast %198 : vector<1x64xf32> to vector<8x64xf32>
    %200 = arith.addf %196, %199 : vector<8x64xf32>
    %201 = arith.mulf %200, %200 : vector<8x64xf32>
    %202 = arith.mulf %200, %201 : vector<8x64xf32>
    %cst_89 = arith.constant 4.471500e-02 : f32
    %203 = vector.broadcast %cst_89 : f32 to vector<8x64xf32>
    %204 = arith.mulf %203, %202 : vector<8x64xf32>
    %205 = arith.addf %200, %204 : vector<8x64xf32>
    %cst_90 = arith.constant 0.797884583 : f32
    %206 = vector.broadcast %cst_90 : f32 to vector<8x64xf32>
    %207 = arith.mulf %206, %205 : vector<8x64xf32>
    %208 = math.tanh %207 : vector<8x64xf32>
    %cst_91 = arith.constant 1.000000e+00 : f32
    %209 = vector.broadcast %cst_91 : f32 to vector<8x64xf32>
    %210 = arith.addf %209, %208 : vector<8x64xf32>
    %cst_92 = arith.constant 5.000000e-01 : f32
    %211 = vector.broadcast %cst_92 : f32 to vector<8x64xf32>
    %212 = arith.mulf %211, %210 : vector<8x64xf32>
    %213 = arith.mulf %200, %212 : vector<8x64xf32>
    %214 = arith.truncf %213 : vector<8x64xf32> to vector<8x64xbf16>
    %c0_93 = arith.constant 0 : index
    %c0_94 = arith.constant 0 : index
    %c0_95 = arith.constant 0 : index
    %215 = vector.load %arg22[%c0_93, %c0_94, %c0_95] : memref<1x64x32xbf16, #tpu.memory_space<vmem>>, vector<1x64x32xbf16>
    %216 = vector.shape_cast %215 : vector<1x64x32xbf16> to vector<64x32xbf16>
    %cst_96 = arith.constant dense<0.000000e+00> : vector<8x32xf32>
    %217 = tpu.matmul %214, %216, %cst_96 {dimension_numbers = #tpu.dot_dimension_numbers<[1], [0], [0], [1], [0, 0, 1, 1], [], []>} : vector<8x64xbf16>, vector<64x32xbf16>, vector<8x32xf32> -> vector<8x32xf32>
    %c0_97 = arith.constant 0 : index
    %c0_98 = arith.constant 0 : index
    %c0_99 = arith.constant 0 : index
    %218 = vector.load %arg23[%c0_97, %c0_98, %c0_99] : memref<1x1x32xf32, #tpu.memory_space<vmem>>, vector<1x1x32xf32>
    %219 = vector.shape_cast %218 : vector<1x1x32xf32> to vector<1x32xf32>
    %220 = vector.broadcast %219 : vector<1x32xf32> to vector<8x32xf32>
    %221 = arith.addf %217, %220 : vector<8x32xf32>
    %222 = tpu.iota {dimensions = array<i32: 0>} : vector<16x1xi32>
    %c0_i32_100 = arith.constant 0 : i32
    %223 = arith.cmpi eq, %arg0, %c0_i32_100 : i32
    %c8_i32 = arith.constant 8 : i32
    %224 = vector.broadcast %c8_i32 : i32 to vector<16x1xi32>
    %225 = arith.cmpi slt, %222, %224 : vector<16x1xi32>
    %226 = vector.broadcast %223 : i1 to vector<16x1xi1>
    %227 = arith.andi %226, %225 : vector<16x1xi1>
    %228 = vector.extract_strided_slice %5 {offsets = [0, 0], sizes = [16, 32], strides = [1, 1]} : vector<24x32xf32> to vector<16x32xf32>
    %229 = vector.extract_strided_slice %135 {offsets = [0, 0], sizes = [16, 32], strides = [1, 1]} : vector<24x32xf32> to vector<16x32xf32>
    %230 = arith.addf %229, %191 : vector<16x32xf32>
    %231 = vector.shape_cast %227 : vector<16x1xi1> to vector<16x1xi1>
    %232 = vector.broadcast %231 : vector<16x1xi1> to vector<16x32xi1>
    %233 = arith.select %232, %228, %230 : vector<16x32xi1>, vector<16x32xf32>
    %c0_101 = arith.constant 0 : index
    %c0_102 = arith.constant 0 : index
    %234 = vector.load %arg30[%c0_101, %c0_102] : memref<24x32xf32, #tpu.memory_space<vmem>>, vector<16x32xf32>
    tpu.vector_store %arg30[%c0_101, %c0_102], %233 {strides = array<i32>} : memref<24x32xf32, #tpu.memory_space<vmem>>, vector<16x32xf32>,
    %235 = vector.extract_strided_slice %135 {offsets = [16, 0], sizes = [8, 32], strides = [1, 1]} : vector<24x32xf32> to vector<8x32xf32>
    %236 = arith.addf %235, %221 : vector<8x32xf32>
    %c16_103 = arith.constant 16 : index
    %c0_104 = arith.constant 0 : index
    %237 = vector.load %arg30[%c16_103, %c0_104] : memref<24x32xf32, #tpu.memory_space<vmem>>, vector<8x32xf32>
    tpu.vector_store %arg30[%c16_103, %c0_104], %236 {strides = array<i32>} : memref<24x32xf32, #tpu.memory_space<vmem>>, vector<8x32xf32>,
    %c1_i32 = arith.constant 1 : i32
    %238 = arith.cmpi eq, %arg0, %c1_i32 : i32
    %c1_i32_105 = arith.constant 1 : i32
    %239 = arith.cmpi eq, %arg1, %c1_i32_105 : i32
    %240 = arith.andi %238, %239 : i1
    %241 = arith.extui %240 : i1 to i32
    %c0_i32_106 = arith.constant 0 : i32
    %242 = arith.cmpi ne, %241, %c0_i32_106 : i32
    scf.if %242 {
      %243 = vector.extract_strided_slice %233 {offsets = [0, 0], sizes = [2, 32], strides = [1, 1]} : vector<16x32xf32> to vector<2x32xf32>
      %244 = arith.truncf %243 : vector<2x32xf32> to vector<2x32xbf16>
      %c0_107 = arith.constant 0 : index
      %c0_108 = arith.constant 0 : index
      %245 = vector.load %arg24[%c0_107, %c0_108] : memref<32x32xbf16, #tpu.memory_space<vmem>>, vector<32x32xbf16>
      %cst_109 = arith.constant dense<0.000000e+00> : vector<2x32xf32>
      %246 = tpu.matmul %244, %245, %cst_109 {dimension_numbers = #tpu.dot_dimension_numbers<[1], [0], [0], [1], [0, 0, 1, 1], [], []>} : vector<2x32xbf16>, vector<32x32xbf16>, vector<2x32xf32> -> vector<2x32xf32>
      %c0_110 = arith.constant 0 : index
      %c0_111 = arith.constant 0 : index
      %247 = vector.load %arg25[%c0_110, %c0_111] : memref<1x32xf32, #tpu.memory_space<vmem>>, vector<1x32xf32>
      %248 = vector.broadcast %247 : vector<1x32xf32> to vector<2x32xf32>
      %249 = arith.addf %246, %248 : vector<2x32xf32>
      %250 = math.tanh %249 : vector<2x32xf32>
      %c0_112 = arith.constant 0 : index
      %c0_113 = arith.constant 0 : index
      %251 = vector.load %arg29[%c0_112, %c0_113] : memref<2x32xf32, #tpu.memory_space<vmem>>, vector<2x32xf32>
      tpu.vector_store %arg29[%c0_112, %c0_113], %250 {strides = array<i32>} : memref<2x32xf32, #tpu.memory_space<vmem>>, vector<2x32xf32>,
      %252 = arith.truncf %250 : vector<2x32xf32> to vector<2x32xbf16>
      %c0_114 = arith.constant 0 : index
      %c0_115 = arith.constant 0 : index
      %253 = vector.load %arg26[%c0_114, %c0_115] : memref<32x5xbf16, #tpu.memory_space<vmem>>, vector<32x5xbf16>
      %cst_116 = arith.constant dense<0.000000e+00> : vector<2x5xf32>
      %254 = tpu.matmul %252, %253, %cst_116 {dimension_numbers = #tpu.dot_dimension_numbers<[1], [0], [0], [1], [0, 0, 1, 1], [], []>} : vector<2x32xbf16>, vector<32x5xbf16>, vector<2x5xf32> -> vector<2x5xf32>
      %c0_117 = arith.constant 0 : index
      %c0_118 = arith.constant 0 : index
      %255 = vector.load %arg27[%c0_117, %c0_118] : memref<1x5xf32, #tpu.memory_space<vmem>>, vector<1x5xf32>
      %256 = vector.broadcast %255 : vector<1x5xf32> to vector<2x5xf32>
      %257 = arith.addf %254, %256 : vector<2x5xf32>
      %c0_119 = arith.constant 0 : index
      %c0_120 = arith.constant 0 : index
      %258 = vector.load %arg28[%c0_119, %c0_120] : memref<2x5xf32, #tpu.memory_space<vmem>>, vector<2x5xf32>
      tpu.vector_store %arg28[%c0_119, %c0_120], %257 {strides = array<i32>} : memref<2x5xf32, #tpu.memory_space<vmem>>, vector<2x5xf32>,
    } else {
    }
    return
  }
  func.func @transform_0(%arg0: i32, %arg1: i32) -> (i32, i32) {
    %c0_i32 = arith.constant 0 : i32
    %c0_i32_0 = arith.constant 0 : i32
    %c0_i32_1 = arith.constant 0 : i32
    return %c0_i32, %c0_i32_0 : i32, i32
  }
  func.func @transform_1(%arg0: i32, %arg1: i32) -> (i32, i32, i32) {
    %c0_i32 = arith.constant 0 : i32
    %c0_i32_0 = arith.constant 0 : i32
    %c0_i32_1 = arith.constant 0 : i32
    %c0_i32_2 = arith.constant 0 : i32
    return %c0_i32, %c0_i32_0, %c0_i32_1 : i32, i32, i32
  }
  func.func @transform_2(%arg0: i32, %arg1: i32) -> (i32, i32, i32) {
    %c0_i32 = arith.constant 0 : i32
    %c0_i32_0 = arith.constant 0 : i32
    %c0_i32_1 = arith.constant 0 : i32
    %c0_i32_2 = arith.constant 0 : i32
    return %c0_i32, %c0_i32_0, %c0_i32_1 : i32, i32, i32
  }
  func.func @transform_3(%arg0: i32, %arg1: i32) -> (i32, i32) {
    %c0_i32 = arith.constant 0 : i32
    %c0_i32_0 = arith.constant 0 : i32
    %c0_i32_1 = arith.constant 0 : i32
    return %c0_i32, %c0_i32_0 : i32, i32
  }
  func.func @transform_4(%arg0: i32, %arg1: i32) -> (i32, i32) {
    %c0_i32 = arith.constant 0 : i32
    %c0_i32_0 = arith.constant 0 : i32
    %c0_i32_1 = arith.constant 0 : i32
    return %c0_i32, %c0_i32_0 : i32, i32
  }
  func.func @transform_5(%arg0: i32, %arg1: i32) -> (i32, i32, i32) {
    %c0_i32 = arith.constant 0 : i32
    %c0_i32_0 = arith.constant 0 : i32
    %c0_i32_1 = arith.constant 0 : i32
    return %arg0, %c0_i32, %c0_i32_0 : i32, i32, i32
  }
  func.func @transform_6(%arg0: i32, %arg1: i32) -> (i32, i32, i32) {
    %c2_i32 = arith.constant 2 : i32
    %0 = arith.muli %arg0, %c2_i32 : i32
    %1 = arith.addi %0, %arg1 : i32
    %c0_i32 = arith.constant 0 : i32
    %c0_i32_0 = arith.constant 0 : i32
    %c0_i32_1 = arith.constant 0 : i32
    return %1, %c0_i32, %c0_i32_0 : i32, i32, i32
  }
  func.func @transform_7(%arg0: i32, %arg1: i32) -> (i32, i32, i32) {
    %c2_i32 = arith.constant 2 : i32
    %0 = arith.muli %arg0, %c2_i32 : i32
    %1 = arith.addi %0, %arg1 : i32
    %c0_i32 = arith.constant 0 : i32
    %c0_i32_0 = arith.constant 0 : i32
    %c0_i32_1 = arith.constant 0 : i32
    return %1, %c0_i32, %c0_i32_0 : i32, i32, i32
  }
  func.func @transform_8(%arg0: i32, %arg1: i32) -> (i32, i32, i32) {
    %c2_i32 = arith.constant 2 : i32
    %0 = arith.muli %arg0, %c2_i32 : i32
    %1 = arith.addi %0, %arg1 : i32
    %c0_i32 = arith.constant 0 : i32
    %c0_i32_0 = arith.constant 0 : i32
    %c0_i32_1 = arith.constant 0 : i32
    return %1, %c0_i32, %c0_i32_0 : i32, i32, i32
  }
  func.func @transform_9(%arg0: i32, %arg1: i32) -> (i32, i32, i32) {
    %c2_i32 = arith.constant 2 : i32
    %0 = arith.muli %arg0, %c2_i32 : i32
    %1 = arith.addi %0, %arg1 : i32
    %c0_i32 = arith.constant 0 : i32
    %c0_i32_0 = arith.constant 0 : i32
    %c0_i32_1 = arith.constant 0 : i32
    return %1, %c0_i32, %c0_i32_0 : i32, i32, i32
  }
  func.func @transform_10(%arg0: i32, %arg1: i32) -> (i32, i32, i32) {
    %c2_i32 = arith.constant 2 : i32
    %0 = arith.muli %arg0, %c2_i32 : i32
    %1 = arith.addi %0, %arg1 : i32
    %c0_i32 = arith.constant 0 : i32
    %c0_i32_0 = arith.constant 0 : i32
    %c0_i32_1 = arith.constant 0 : i32
    return %1, %c0_i32, %c0_i32_0 : i32, i32, i32
  }
  func.func @transform_11(%arg0: i32, %arg1: i32) -> (i32, i32, i32) {
    %c2_i32 = arith.constant 2 : i32
    %0 = arith.muli %arg0, %c2_i32 : i32
    %1 = arith.addi %0, %arg1 : i32
    %c0_i32 = arith.constant 0 : i32
    %c0_i32_0 = arith.constant 0 : i32
    %c0_i32_1 = arith.constant 0 : i32
    return %1, %c0_i32, %c0_i32_0 : i32, i32, i32
  }
  func.func @transform_12(%arg0: i32, %arg1: i32) -> (i32, i32, i32) {
    %c2_i32 = arith.constant 2 : i32
    %0 = arith.muli %arg0, %c2_i32 : i32
    %1 = arith.addi %0, %arg1 : i32
    %c0_i32 = arith.constant 0 : i32
    %c0_i32_0 = arith.constant 0 : i32
    %c0_i32_1 = arith.constant 0 : i32
    return %1, %c0_i32, %c0_i32_0 : i32, i32, i32
  }
  func.func @transform_13(%arg0: i32, %arg1: i32) -> (i32, i32, i32) {
    %c2_i32 = arith.constant 2 : i32
    %0 = arith.muli %arg0, %c2_i32 : i32
    %1 = arith.addi %0, %arg1 : i32
    %c0_i32 = arith.constant 0 : i32
    %c0_i32_0 = arith.constant 0 : i32
    %c0_i32_1 = arith.constant 0 : i32
    return %1, %c0_i32, %c0_i32_0 : i32, i32, i32
  }
  func.func @transform_14(%arg0: i32, %arg1: i32) -> (i32, i32, i32) {
    %c2_i32 = arith.constant 2 : i32
    %0 = arith.muli %arg0, %c2_i32 : i32
    %1 = arith.addi %0, %arg1 : i32
    %c0_i32 = arith.constant 0 : i32
    %c0_i32_0 = arith.constant 0 : i32
    %c0_i32_1 = arith.constant 0 : i32
    return %1, %c0_i32, %c0_i32_0 : i32, i32, i32
  }
  func.func @transform_15(%arg0: i32, %arg1: i32) -> (i32, i32, i32) {
    %c2_i32 = arith.constant 2 : i32
    %0 = arith.muli %arg0, %c2_i32 : i32
    %1 = arith.addi %0, %arg1 : i32
    %c0_i32 = arith.constant 0 : i32
    %c0_i32_0 = arith.constant 0 : i32
    %c0_i32_1 = arith.constant 0 : i32
    return %1, %c0_i32, %c0_i32_0 : i32, i32, i32
  }
  func.func @transform_16(%arg0: i32, %arg1: i32) -> (i32, i32, i32) {
    %c2_i32 = arith.constant 2 : i32
    %0 = arith.muli %arg0, %c2_i32 : i32
    %1 = arith.addi %0, %arg1 : i32
    %c0_i32 = arith.constant 0 : i32
    %c0_i32_0 = arith.constant 0 : i32
    %c0_i32_1 = arith.constant 0 : i32
    return %1, %c0_i32, %c0_i32_0 : i32, i32, i32
  }
  func.func @transform_17(%arg0: i32, %arg1: i32) -> (i32, i32, i32) {
    %c2_i32 = arith.constant 2 : i32
    %0 = arith.muli %arg0, %c2_i32 : i32
    %1 = arith.addi %0, %arg1 : i32
    %c0_i32 = arith.constant 0 : i32
    %c0_i32_0 = arith.constant 0 : i32
    %c0_i32_1 = arith.constant 0 : i32
    return %1, %c0_i32, %c0_i32_0 : i32, i32, i32
  }
  func.func @transform_18(%arg0: i32, %arg1: i32) -> (i32, i32, i32) {
    %c2_i32 = arith.constant 2 : i32
    %0 = arith.muli %arg0, %c2_i32 : i32
    %1 = arith.addi %0, %arg1 : i32
    %c0_i32 = arith.constant 0 : i32
    %c0_i32_0 = arith.constant 0 : i32
    %c0_i32_1 = arith.constant 0 : i32
    return %1, %c0_i32, %c0_i32_0 : i32, i32, i32
  }
  func.func @transform_19(%arg0: i32, %arg1: i32) -> (i32, i32, i32) {
    %c2_i32 = arith.constant 2 : i32
    %0 = arith.muli %arg0, %c2_i32 : i32
    %1 = arith.addi %0, %arg1 : i32
    %c0_i32 = arith.constant 0 : i32
    %c0_i32_0 = arith.constant 0 : i32
    %c0_i32_1 = arith.constant 0 : i32
    return %1, %c0_i32, %c0_i32_0 : i32, i32, i32
  }
  func.func @transform_20(%arg0: i32, %arg1: i32) -> (i32, i32, i32) {
    %c2_i32 = arith.constant 2 : i32
    %0 = arith.muli %arg0, %c2_i32 : i32
    %1 = arith.addi %0, %arg1 : i32
    %c0_i32 = arith.constant 0 : i32
    %c0_i32_0 = arith.constant 0 : i32
    %c0_i32_1 = arith.constant 0 : i32
    return %1, %c0_i32, %c0_i32_0 : i32, i32, i32
  }
  func.func @transform_21(%arg0: i32, %arg1: i32) -> (i32, i32, i32) {
    %c2_i32 = arith.constant 2 : i32
    %0 = arith.muli %arg0, %c2_i32 : i32
    %1 = arith.addi %0, %arg1 : i32
    %c0_i32 = arith.constant 0 : i32
    %c0_i32_0 = arith.constant 0 : i32
    %c0_i32_1 = arith.constant 0 : i32
    return %1, %c0_i32, %c0_i32_0 : i32, i32, i32
  }
  func.func @transform_22(%arg0: i32, %arg1: i32) -> (i32, i32) {
    %c0_i32 = arith.constant 0 : i32
    %c0_i32_0 = arith.constant 0 : i32
    %c0_i32_1 = arith.constant 0 : i32
    return %c0_i32, %c0_i32_0 : i32, i32
  }
  func.func @transform_23(%arg0: i32, %arg1: i32) -> (i32, i32) {
    %c0_i32 = arith.constant 0 : i32
    %c0_i32_0 = arith.constant 0 : i32
    %c0_i32_1 = arith.constant 0 : i32
    return %c0_i32, %c0_i32_0 : i32, i32
  }
  func.func @transform_24(%arg0: i32, %arg1: i32) -> (i32, i32) {
    %c0_i32 = arith.constant 0 : i32
    %c0_i32_0 = arith.constant 0 : i32
    %c0_i32_1 = arith.constant 0 : i32
    return %c0_i32, %c0_i32_0 : i32, i32
  }
  func.func @transform_25(%arg0: i32, %arg1: i32) -> (i32, i32) {
    %c0_i32 = arith.constant 0 : i32
    %c0_i32_0 = arith.constant 0 : i32
    %c0_i32_1 = arith.constant 0 : i32
    return %c0_i32, %c0_i32_0 : i32, i32
  }
  func.func @transform_26(%arg0: i32, %arg1: i32) -> (i32, i32) {
    %c0_i32 = arith.constant 0 : i32
    %c0_i32_0 = arith.constant 0 : i32
    %c0_i32_1 = arith.constant 0 : i32
    return %c0_i32, %c0_i32_0 : i32, i32
  }
  func.func @transform_27(%arg0: i32, %arg1: i32) -> (i32, i32) {
    %c0_i32 = arith.constant 0 : i32
    %c0_i32_0 = arith.constant 0 : i32
    %c0_i32_1 = arith.constant 0 : i32
    return %c0_i32, %c0_i32_0 : i32, i32
  }
}

</mosaic_0001>

<bundles_post_ra>
// kernel: _lambda_.1
= control target key start
LH: loop header
LB: loop body
LE: loop exit
PB: predicated region body
PF: predicated region fallthrough
CT: control target
= control target key end

     0   :  { %s3808_s0 = inlined_call_operand.vmem [shape: f32[16,4], index: 0, kind: input, shape index: {}]   ;;  %s3809_s1 = inlined_call_operand.vmem [shape: bf16[2,4,32], index: 1, kind: input, shape index: {}]   ;;  %s3810_s2 = inlined_call_operand.vmem [shape: f32[2,1,32], index: 2, kind: input, shape index: {}]   ;;  %s3811_s3 = inlined_call_operand.vmem [shape: f32[8,32], index: 3, kind: input, shape index: {}]   ;;  %s3812_s4 = inlined_call_operand.vmem [shape: f32[1,32], index: 4, kind: input, shape index: {}]   ;;  %s3813_s5 = inlined_call_operand.vmem [shape: f32[2,24,24], index: 5, kind: input, shape index: {}]   ;;  %s3814_s6 = inlined_call_operand.vmem [shape: f32[4,1,32], index: 6, kind: input, shape index: {}]   ;;  %s3815_s7 = inlined_call_operand.vmem [shape: f32[4,1,32], index: 7, kind: input, shape index: {}]   ;;  %s3816_s8 = inlined_call_operand.vmem [shape: bf16[4,32,96], index: 8, kind: input, shape index: {}]   ;;  %s3817_s9 = inlined_call_operand.vmem [shape: f32[4,1,96], index: 9, kind: input, shape index: {}]   ;;  %s3818_s10 = inlined_call_operand.vmem [shape: bf16[4,32,32], index: 10, kind: input, shape index: {}]   ;;  %s3819_s11 = inlined_call_operand.vmem [shape: f32[4,1,32], index: 11, kind: input, shape index: {}]   ;;  %s3820_s12 = inlined_call_operand.vmem [shape: f32[4,1,32], index: 12, kind: input, shape index: {}]   ;;  %s3821_s13 = inlined_call_operand.vmem [shape: f32[4,1,32], index: 13, kind: input, shape index: {}]   ;;  %s3822_s14 = inlined_call_operand.vmem [shape: bf16[4,32,64], index: 14, kind: input, shape index: {}]   ;;  %s3823_s15 = inlined_call_operand.vmem [shape: f32[4,1,64], index: 15, kind: input, shape index: {}]   ;;  %s3824_s16 = inlined_call_operand.vmem [shape: bf16[4,64,32], index: 16, kind: input, shape index: {}]   ;;  %s3825_s17 = inlined_call_operand.vmem [shape: f32[4,1,32], index: 17, kind: input, shape index: {}]   ;;  %s3826_s18 = inlined_call_operand.vmem [shape: bf16[4,32,64], index: 18, kind: input, shape index: {}]   ;;  %s3827_s19 = inlined_call_operand.vmem [shape: f32[4,1,64], index: 19, kind: input, shape index: {}]   ;;  %s3828_s20 = inlined_call_operand.vmem [shape: bf16[4,64,32], index: 20, kind: input, shape index: {}]   ;;  %s3829_s21 = inlined_call_operand.vmem [shape: f32[4,1,32], index: 21, kind: input, shape index: {}]   ;;  %s3830_s22 = inlined_call_operand.vmem [shape: bf16[32,32], index: 22, kind: input, shape index: {}]   ;;  %s3831_s23 = inlined_call_operand.vmem [shape: f32[1,32], index: 23, kind: input, shape index: {}]   ;;  %s3832_s24 = inlined_call_operand.vmem [shape: bf16[32,5], index: 24, kind: input, shape index: {}]   ;;  %s3833_s25 = inlined_call_operand.vmem [shape: f32[1,5], index: 25, kind: input, shape index: {}]   ;;  %s3834_s26 = inlined_call_operand.hbm [shape: f32[2,5], index: 26, kind: output, shape index: {0}]   ;;  %s3835_s27 = inlined_call_operand.hbm [shape: f32[2,32], index: 27, kind: output, shape index: {1}]  }
   0x1   :  { %3849 = sst [smem:[#allocation19_spill]] %s3808_s0 }
   0x2   :  { %3850 = sst [smem:[#allocation20_spill]] %s3809_s1 }
   0x3   :  { %3851 = sst [smem:[#allocation21_spill]] %s3810_s2 }
   0x4   :  { %3852 = sst [smem:[#allocation22_spill]] %s3811_s3 }
   0x5   :  { %3853 = sst [smem:[#allocation23_spill]] %s3812_s4 }
   0x6   :  { %3854 = sst [smem:[#allocation24_spill]] %s3813_s5 }
   0x7   :  { %3855 = sst [smem:[#allocation25_spill]] %s3814_s6 }
   0x8   :  { %3856 = sst [smem:[#allocation26_spill]] %s3815_s7 }
   0x9   :  { %3857 = sst [smem:[#allocation27_spill]] %s3816_s8 }
   0xa   :  { %3858 = sst [smem:[#allocation28_spill]] %s3817_s9 }
   0xb   :  { %3859 = sst [smem:[#allocation29_spill]] %s3818_s10 }
   0xc   :  { %3860 = sst [smem:[#allocation30_spill]] %s3819_s11 }
   0xd   :  { %3861 = sst [smem:[#allocation31_spill]] %s3822_s14 }
   0xe   :  { %3862 = sst [smem:[#allocation32_spill]] %s3830_s22 }
   0xf   :  { %3863 = sst [smem:[#allocation33_spill]] %s3831_s23 }
  0x10   :  { %3864 = sst [smem:[#allocation34_spill]] %s3832_s24 }
  0x11   :  { %3865 = sst [smem:[#allocation35_spill]] %s3833_s25 }
  0x12   :  { %3866 = sst [smem:[#allocation36_spill]] %s3834_s26 }
  0x13   :  { %3867 = sst [smem:[#allocation37_spill]] %s3835_s27 }
  0x14   :  { %33 = vsyncpa [#allocation5], 0 }
  0x15   :  { %34 = vsyncpa [#allocation7], 0  ;;  %s3310_s7 = smov 0   ;;  %s3312_s4 = smov 0  }
  0x16   :  { %s3314_s8 = smov 0   ;;  %s3316_s30 = smov 0  }
  0x17   :  { %s3318_s9 = smov 0  }
  0x18 LB: > { %3868 = sst [smem:[#allocation10_spill]] %s3135_s7  ;;  %s49_s28 = sadd.s32 1, %s3143_s8  ;;  %s3151_s9 = sphi %s3318_s9, %s40_s9   ;;  %s3147_s30 = sphi %s3316_s30, %s3921_s30   ;;  %s3143_s8 = sphi %s3314_s8, %s3920_s8   ;;  %s3139_s4 = sphi %s3312_s4, %s3919_s4   ;;  %s3135_s7 = sphi %s3310_s7, %s3918_s7  }
  0x19   : > { %3869 = sst [smem:[#allocation11_spill]] %s3139_s4  ;;  %p50_p0 = scmp.ge.s32.totalorder %s49_s28, 2 }
  0x1a   : > { %3870 = sst [smem:[#allocation12_spill]] %s3143_s8  ;;  %s52_s0 = sadd.s32 1, %s3147_s30 }
  0x1b   : > { %3871 = sst [smem:[#allocation13_spill]] %s3147_s30  ;;  %p2721_p1 = scmp.ge.s32.totalorder %s3151_s9, 1 }
  0x1c   : > { %3872 = sst [smem:[#allocation14_spill]] %s3151_s9  ;;  %p1012_p2 = scmp.lt.s32.totalorder %s3151_s9, 5 }
  0x1d   : > { %s3923_s28 = smov (%p50_p0, %s49_s28), 0  ;;  %s3925_s0 = smov (!%p50_p0, %s52_s0), %s3147_s30 }
  0x1e   : > { %3873 = sst [smem:[#allocation15_spill]] %s3923_s28  ;;  %p1013_p3 = pnand %p2721_p1, %p1012_p2 }
  0x1f   : > { %p54_p4 = scmp.ge.s32.totalorder %s3925_s0, 2 }
  0x20   : > { %1016 = sbr.rel (%p1013_p3) target bundleno = 2996 (0xbb4), region = 124 }
  0x21   : > { %s3927_s0 = smov (%p54_p4, %s3925_s0), 0 }
  0x22   : > { %3874 = sst [smem:[#allocation16_spill]] %s3927_s0 }
  0x25   : > { %p1171_p5 = scmp.lt.s32.totalorder %s3139_s4, 1  ;;  %s2723_s10 = sshll.u32 %s3139_s4, 1 }
  0x26   : > { %s1177_s29 = sadd.s32 %s3135_s7, %s2723_s10  ;;  %p1301_p6 = scmp.eq.s32.totalorder %s3139_s4, 0 }
  0x27   : > { %s1172_s1 = scalar_select %p1171_p5, %s3139_s4, 1 }
  0x28   : > { %p1178_p7 = scmp.lt.s32.totalorder %s1177_s29, 3  ;;  %p1302_p8 = scmp.eq.s32.totalorder %s3135_s7, 0 }
  0x29   : > { %s2893_s6 = smul.u32 24, %s1172_s1  ;;  %s3875_s3 = sld [smem:[#allocation24_spill]] }
  0x2a   : > { %s3929_s29 = smov (!%p1178_p7, %s1177_s29), 3  ;;  %p3360_p9 = pnand %p1302_p8, %p1301_p6 }
  0x2b   : > { %s2867_s26 = sshll.u32 %s3929_s29, 4  ;;  %s3882_s22 = sld [smem:[#allocation27_spill]] }
  0x2c   : > { %s3877_s1 = scalar_select %p3360_p9, 1, 0 }
  0x2d   : > { %s3883_s5 = sld [smem:[#allocation29_spill]]  ;;  %s1265_s25 = scalar_lea.vmem %s3825_s17, %s3929_s29 }
  0x2e   : > { %3878 = sst [smem:[#allocation18_spill]] %s3877_s1  ;;  %s3421_s23 = scalar_lea.vmem %s3826_s18, %s2867_s26 }
  0x2f   : > { %s3356_s10 = scalar_lea.vmem %s3875_s3, %s2893_s6  ;;  %s3885_s14 = sld [smem:[#allocation31_spill]] }
  0x30   : > { %3876 = sst [smem:[#allocation17_spill]] %s3356_s10  ;;  %s2870_s3 = sshll.u32 %s3929_s29, 5 }
  0x31   : > { %s3380_s7 = scalar_lea.vmem %s3882_s22, %s2867_s26  ;;  %s3412_s30 = scalar_lea.vmem %s3824_s16, %s2870_s3 }
  0x32   : > { %s1281_s4 = scalar_lea.vmem %s3827_s19, %s3929_s29  ;;  %s3430_s8 = scalar_lea.vmem %s3828_s20, %s2870_s3 }
  0x33   : > { %s3385_s0 = scalar_lea.vmem %s3883_s5, %s2867_s26  ;;  %1306 = sbr.rel (%p3360_p9) target bundleno = 198 (0xc6), region = 128 }
  0x34   : > { %s3888_s3 = sld [smem:[#allocation19_spill]] (!%p3360_p9) }
  0x35   : > { %s3402_s24 = scalar_lea.vmem %s3885_s14, %s2867_s26  ;;  %s3887_s26 = sld [smem:[#allocation20_spill]] (!%p3360_p9) }
  0x36   : > { %s3889_s28 = sld [smem:[#allocation23_spill]] (!%p3360_p9) }
  0x37   : > { %s3890_s1 = sld [smem:[#allocation21_spill]] (!%p3360_p9) }
  0x38   : > { %vm1319_vm0 = vcmask 1041408   ;;  %vm1315_vm1 = vcmask 31744   ;;  %vm1370_vm2 = vcmask 261120   ;;  %s3891_s14 = sld [smem:[#allocation22_spill]] }
  0x3a   : > { %v1308_v2 = vld [vmem:[%s3888_s3] sm:$0xff]  ;;  %v1337_v6 = vld [vmem:[%s3888_s3 + $0x8] sm:$0xff] }
  0x3b   : > { %v1310_v0 = vld [vmem:[%s3887_s26] sm:$0x3]  ;;  %v2752_v1 = vld [vmem:[%s3887_s26 + $0x2] sm:$0x3]  ;;  %v1309_v5 = vpack.c.bf16 %v1308_v2, %v1308_v2  ;;  %v1338_v7 = vpack.c.bf16 %v1337_v6, %v1337_v6 }
  0x3c   : > { %v1321_v3 = vsel %vm1319_vm0, %v1310_v0, 0  ;;  %v1350_v4 = vsel %vm1319_vm0, %v2752_v1, 0  ;;  %v2964_v8 = vld [vmem:[%s3889_s28] ss:$0 sm:$0xff] }
  0x3d   : > { %1330 = vmatpush.bf16.msra.mxu0 %v1321_v3  ;;  %1359 = vmatpush.bf16.msra.mxu1 %v1350_v4  ;;  %1371 = vst.msk [vmem:[#allocation2] sm:$0xff] %vm1370_vm2, %v2964_v8  ;;  %v2963_v9 = vld [vmem:[%s3890_s1] ss:$0 sm:$0xff]  ;;  %v2965_v10 = vld [vmem:[%s3890_s1 + $0x1] ss:$0 sm:$0xff] }
  0x3e   : > { %v1307_v11 = vld [vmem:[%s3891_s14] sm:$0xff] }
  0x40   : > { %2751 = vmatmul.msk.bf16.vlgmr.msra.gmra.mxu0 %vm1315_vm1, %v1309_v5  ;;  %2754 = vmatmul.msk.bf16.vlgmr.msra.gmra.mxu1 %vm1315_vm1, %v1338_v7 }
  0xbd   : > { %v1332_v12 = vpop.f32.mrf.mxu0  ;;  %v1361_v13 = vpop.f32.mrf.mxu1 }
  0xbe   : > { %v1333_v14 = vadd.f32 %v2963_v9, %v1332_v12  ;;  %v1362_v15 = vadd.f32 %v2965_v10, %v1361_v13 }
  0xc0   : > { %v1336_v16 = vadd.f32 %v1333_v14, %v1307_v11  ;;  %v1365_v17 = vadd.f32 %v1362_v15, %v1307_v11 }
  0xc2   : > { %1372 = vst.msk [vmem:[#allocation2 + $0x8] sm:$0xff] %vm1370_vm2, %v1336_v16 }
  0xc3   : > { %1373 = vst.msk [vmem:[#allocation2 + $0x10] sm:$0xff] %vm1370_vm2, %v1365_v17 }
  0xc5   : > { %v1334_v18 = vpop.f32.mrf.mxu0  ;;  %v1363_v19 = vpop.f32.mrf.mxu1 }
  0xc6 PF: > { %v3462_v20 = vld [vmem:[#allocation2] sm:$0xff]  ;;  %vm1379_vm3 = vcmask 261120   ;;  %v3153_v26 = vmov 32.0   ;;  %v2874_v48 = vld [vmem:[%s3380_s7 + $0x8] sm:$0xff]  ;;  %s3892_s11 = sld [smem:[#allocation25_spill]]  ;;  %s3157_s28 = smov 120  }
  0xc7   : > { %v1380_v22 = vsel %vm1379_vm3, %v3462_v20, 0.0  ;;  %2976 = vrcp.f32 %v3153_v26  ;;  %1499 = vmatpush.bf16.msra.mxu0 %v2874_v48  ;;  %v2873_v51 = vld [vmem:[%s3380_s7] sm:$0xff]  ;;  %s3894_s9 = sld [smem:[#allocation26_spill]]  ;;  %s3154_s7 = smov 96   ;;  %vm1522_vm14 = vcmask 64512   ;;  %vm1600_vm15 = vcmask 1043456  }
  0xc8   : > { %1381 = vadd.xlane.f32.xlu0 %v1380_v22  ;;  %s3896_s2 = sld [smem:[#allocation28_spill]]  ;;  %vm1553_vm0 = vcmask 195584   ;;  %s3160_s5 = smov 104   ;;  %vm1742_vm1 = vcmask 130112   ;;  %vm1863_vm2 = vcmask 195712  }
  0xc9   : > { %v3470_v24 = vld [vmem:[#allocation2 + $0x8] sm:$0xff]  ;;  %s3898_s6 = sld [smem:[#allocation17_spill]]  ;;  %s3161_s10 = smov 112  }
  0xca   : > { %v3464_v21 = vld [vmem:[#allocation2 + $0x10] sm:$0xff]  ;;  %v1383_v25 = vsel %vm1379_vm3, %v3470_v24, 0.0 }
  0xcb   : > { %v1386_v23 = vsel %vm1379_vm3, %v3464_v21, 0.0  ;;  %1500 = vmatpush.bf16.msra.mxu0 %v2873_v51 }
  0xcc   : > { %1387 = vadd.xlane.f32.xlu1 %v1386_v23  ;;  %s3893_s27 = scalar_lea.vmem %s3892_s11, %s3929_s29  ;;  %s3155_s11 = smov 88  }
  0xcd   : > { %v2977_v27 = vpop.eup %2976  ;;  %v2966_v9 = vld [vmem:[%s3893_s27] ss:$0 sm:$0xff]  ;;  %s3895_s22 = scalar_lea.vmem %s3894_s9, %s3929_s29  ;;  %s3156_s27 = smov 64  }
  0xce   : > { %v1390_v28 = vmul.f32 32.0, %v2977_v27  ;;  %vm1394_vm4 = vweird.f32 %v2977_v27  ;;  %v2967_v16 = vld [vmem:[%s3895_s22] ss:$0 sm:$0xff]  ;;  %s3897_s14 = scalar_lea.vmem %s3896_s2, %s3929_s29  ;;  %s3158_s9 = smov 80  }
  0xcf   : > { %s3159_s22 = smov 72   ;;  %s3162_s2 = smov 56  }
  0xd0   : > { %1384 = vadd.xlane.f32.xlu0 %v1383_v25  ;;  %v1391_v29 = vsub.f32 1.0, %v1390_v28 }
  0xd2   : > { %v1392_v30 = vmul.f32 %v2977_v27, %v1391_v29 }
  0xd4   : > { %v1393_v31 = vadd.f32 %v2977_v27, %v1392_v30 }
  0xd6   : > { %v3474_v32 = vsel %vm1394_vm4, %v2977_v27, %v1393_v31  ;;  %vm1984_vm4 = vcmask 261312  }
 0x13b   : > { %v1382_v33 = vpop.xlane.xlu0 %1381 }
 0x13c   : > { %v1396_v34 = vmul.f32 %v3474_v32, %v1382_v33 }
 0x13e   : > { %v1399_v35 = vsub.f32 %v3462_v20, %v1396_v34  ;;  %v2968_v34 = vld [vmem:[%s3897_s14] ss:$0 sm:$0xff]  ;;  %s3163_s14 = smov 48  }
 0x13f   : > { %v1388_v37 = vpop.xlane.xlu1 %1387 }
 0x140   : > { %v1402_v36 = vmul.f32 %v1399_v35, %v1399_v35  ;;  %v1398_v41 = vmul.f32 %v3474_v32, %v1388_v37 }
 0x142   : > { %v1405_v38 = vsel %vm1379_vm3, %v1402_v36, 0.0  ;;  %v3483_v43 = vsub.f32 %v3464_v21, %v1398_v41 }
 0x143   : > { %1406 = vadd.xlane.f32.xlu1 %v1405_v38  ;;  %v1385_v39 = vpop.xlane.xlu0 %1384 }
 0x144   : > { %v1397_v40 = vmul.f32 %v3474_v32, %v1385_v39  ;;  %v1404_v46 = vmul.f32 %v3483_v43, %v3483_v43 }
 0x146   : > { %v1400_v42 = vsub.f32 %v3470_v24, %v1397_v40  ;;  %v1411_v47 = vsel %vm1379_vm3, %v1404_v46, 0.0 }
 0x148   : > { %v1403_v44 = vmul.f32 %v1400_v42, %v1400_v42 }
 0x14a   : > { %v1408_v45 = vsel %vm1379_vm3, %v1403_v44, 0.0 }
 0x14b   : > { %1409 = vadd.xlane.f32.xlu2 %v1408_v45 }
 0x153   : > { %1412 = vadd.xlane.f32.xlu2 %v1411_v47 }
 0x1b6   : > { %v1407_v49 = vpop.xlane.xlu1 %1406 }
 0x1b7   : > { %v1414_v50 = vmul.f32 %v1407_v49, %v3474_v32 }
 0x1b9   : > { %v1417_v52 = vadd.f32 1e-05, %v1414_v50 }
 0x1bb   : > { %2978 = vrsqrt.f32 %v1417_v52  ;;  %vm1426_vm6 = vweird.f32 %v1417_v52 }
 0x1be   : > { %v1410_v53 = vpop.xlane.xlu2 %1409 }
 0x1bf   : > { %v1415_v54 = vmul.f32 %v1410_v53, %v3474_v32 }
 0x1c1   : > { %v2979_v55 = vpop.eup %2978  ;;  %v1418_v56 = vadd.f32 1e-05, %v1415_v54 }
 0x1c2   : > { %v1421_v57 = vmul.f32 %v2979_v55, %v1417_v52  ;;  %vm1427_vm5 = vweird.f32 %v2979_v55  ;;  %v3533_v52 = vld [vmem:[%s3898_s6] sm:$0xff] }
 0x1c3   : > { %2980 = vrsqrt.f32 %v1418_v56  ;;  %vm1428_vm7 = vmor %vm1426_vm6, %vm1427_vm5  ;;  %vm1436_vm9 = vweird.f32 %v1418_v56 }
 0x1c4   : > { %v1422_v58 = vmul.f32 %v2979_v55, %v1421_v57 }
 0x1c6   : > { %v1423_v59 = vmul.f32 0.5, %v1422_v58  ;;  %v1413_v60 = vpop.xlane.xlu2 %1412 }
 0x1c7   : > { %v1416_v61 = vmul.f32 %v1413_v60, %v3474_v32 }
 0x1c8   : > { %v1424_v62 = vsub.f32 1.5, %v1423_v59 }
 0x1c9   : > { %v2981_v63 = vpop.eup %2980  ;;  %v1419_v0 = vadd.f32 1e-05, %v1416_v61 }
 0x1ca   : > { %v1425_v1 = vmul.f32 %v2979_v55, %v1424_v62  ;;  %v1431_v2 = vmul.f32 %v2981_v63, %v1418_v56  ;;  %vm1437_vm8 = vweird.f32 %v2981_v63  ;;  %v3538_v56 = vld [vmem:[%s3898_s6 + $0x8] sm:$0xff]  ;;  %v3545_v62 = vld [vmem:[%s3898_s6 + $0x10] sm:$0xff]  ;;  %s3905_s6 = sld [smem:[#allocation10_spill]] }
 0x1cb   : > { %2982 = vrsqrt.f32 %v1419_v0  ;;  %vm1438_vm10 = vmor %vm1436_vm9, %vm1437_vm8  ;;  %vm1446_vm11 = vweird.f32 %v1419_v0 }
 0x1cc   : > { %v1432_v3 = vmul.f32 %v2981_v63, %v1431_v2  ;;  %v1429_v4 = vsel %vm1428_vm7, %v2979_v55, %v1425_v1 }
 0x1cd   : > { %v1450_v8 = vmul.f32 %v1429_v4, %v1399_v35 }
 0x1ce   : > { %v1433_v5 = vmul.f32 0.5, %v1432_v3 }
 0x1cf   : > { %v1456_v15 = vmul.f32 %v2966_v9, %v1450_v8 }
 0x1d0   : > { %v1434_v6 = vsub.f32 1.5, %v1433_v5  ;;  %p2356_p11 = scmp.eq.s32.totalorder %s3905_s6, 1 }
 0x1d1   : > { %v2983_v7 = vpop.eup %2982  ;;  %v1462_v22 = vadd.f32 %v2967_v16, %v1456_v15 }
 0x1d2   : > { %v1435_v10 = vmul.f32 %v2981_v63, %v1434_v6  ;;  %v1441_v11 = vmul.f32 %v2983_v7, %v1419_v0  ;;  %vm1447_vm12 = vweird.f32 %v2983_v7 }
 0x1d3   : > { %vm1448_vm13 = vmor %vm1446_vm11, %vm1447_vm12 }
 0x1d4   : > { %v1439_v12 = vsel %vm1438_vm10, %v2981_v63, %v1435_v10  ;;  %v1442_v13 = vmul.f32 %v2983_v7, %v1441_v11 }
 0x1d5   : > { %v1451_v14 = vmul.f32 %v1439_v12, %v1400_v42 }
 0x1d6   : > { %v1443_v17 = vmul.f32 0.5, %v1442_v13 }
 0x1d7   : > { %v1457_v18 = vmul.f32 %v2966_v9, %v1451_v14 }
 0x1d8   : > { %v1444_v19 = vsub.f32 1.5, %v1443_v17 }
 0x1d9   : > { %v1463_v23 = vadd.f32 %v2967_v16, %v1457_v18 }
 0x1da   : > { %v1445_v25 = vmul.f32 %v2983_v7, %v1444_v19 }
 0x1db   : > { %v1465_v26 = vpack.c.bf16 %v1463_v23, %v1462_v22 }
 0x1dc   : > { %v1449_v27 = vsel %vm1448_vm13, %v2983_v7, %v1445_v25 }
 0x1dd   : > { %2763 = vmatmul.msk.bf16.vlgmr.msra.gmra.mxu0 %vm1379_vm3, %v1465_v26  ;;  %v1452_v28 = vmul.f32 %v1449_v27, %v3483_v43 }
 0x1df   : > { %v1458_v29 = vmul.f32 %v2966_v9, %v1452_v28 }
 0x1e1   : > { %v1464_v30 = vadd.f32 %v2967_v16, %v1458_v29 }
 0x1e3   : > { %v1466_v31 = vpack.c.bf16 %v1464_v30, %v1464_v30 }
 0x1ed   : > { %2764 = vmatmul.msk.bf16.gmra.mxu0 %vm1379_vm3, %v1466_v31 }
 0x25a   : > { %v1502_v33 = vpop.f32.mrf.mxu0 }
 0x25b   : > { %v1503_v36 = vadd.f32 %v2968_v34, %v1502_v33 }
 0x262   : > { %v1504_v35 = vpop.f32.mrf.mxu0 }
 0x263   : > { %v1505_v37 = vadd.f32 %v2968_v34, %v1504_v35 }
 0x265   : > { %v3512_v38 = vpack.c.bf16 %v1505_v37, %v1503_v36 }
 0x267   : > { %1518 = vrot.lane.b32.xlu1 %v3512_v38, %s3154_s7 }
 0x26a   : > { %v1507_v39 = vpop.f32.mrf.mxu0 }
 0x26b   : > { %v1508_v40 = vadd.f32 %v2968_v34, %v1507_v39 }
 0x26d   : > { %v3515_v41 = vpack.c.bf16 %v1508_v40, %v1508_v40 }
 0x26f   : > { %1520 = vrot.lane.b32.xlu0 %v3515_v41, %s3154_s7  ;;  %s3164_s7 = smov 40  }
 0x272   : > { %v1509_v42 = vpop.f32.mrf.mxu0 }
 0x277   : > { %1631 = vrot.lane.b32.xlu0 %v3515_v41, %s3155_s11 }
 0x27f   : > { %1591 = vrot.lane.b32.xlu0 %v3515_v41, %s3156_s27 }
 0x287   : > { %1589 = vrot.lane.b32.xlu0 %v3512_v38, %s3156_s27  ;;  %s3166_s27 = smov 16  }
 0x28f   : > { %1625 = vrot.lane.b32.xlu0 %v3512_v38, %s3157_s28 }
 0x2d9   : > { %v1519_v45 = vpop.permute.xlu1 %1518 }
 0x2da   : > { %v1530_v47 = vsel %vm1522_vm14, %v1519_v45, 0 }
 0x2e1   : > { %v1521_v43 = vpop.permute.xlu0 %1520 }
 0x2e2   : > { %v1533_v44 = vsel %vm1522_vm14, %v1521_v43, 0 }
 0x2e3   : > { %1541 = vmatpush.bf16.xpose.msra.mxu1 %v1533_v44 }
 0x2e9   : > { %v1632_v46 = vpop.permute.xlu0 %1631 }
 0x2ea   : > { %v1643_v48 = vsel %vm1522_vm14, %v1632_v46, 0 }
 0x2eb   : > { %1542 = vmatpush.bf16.xpose.msra.mxu1 %v1530_v47  ;;  %1651 = vmatpush.bf16.xpose.msra.mxu3 %v1643_v48 }
 0x2f1   : > { %v1592_v49 = vpop.permute.xlu0 %1591 }
 0x2f2   : > { %2765 = vmatmul.msk.bf16.vlgmr.msra.gmra.mxu1 %vm1522_vm14, %v3512_v38  ;;  %v1602_v50 = vsel %vm1600_vm15, %v1592_v49, 0 }
 0x2f3   : > { %1610 = vmatpush.bf16.msra.mxu2 %v1602_v50 }
 0x2f9   : > { %v1590_v51 = vpop.permute.xlu0 %1589 }
 0x2fa   : > { %1611 = vmatpush.bf16.msra.mxu2 %v1590_v51 }
 0x301   : > { %v1626_v13 = vpop.permute.xlu0 %1625 }
 0x302   : > { %2766 = vmatmul.msk.bf16.gmra.mxu1 %vm1522_vm14, %v3515_v41 }
 0x36f   : > { %v1544_v53 = vpop.f32.mrf.mxu1 }
 0x370   : > { %v1545_v54 = vadd.f32 %v1544_v53, %v3533_v52 }
 0x372   : > { %v1554_v55 = vsel %vm1553_vm0, %v1545_v54, -inf }
 0x373   : > { %1555 = vmax.xlane.f32.xlu2 %v1554_v55 }
 0x377   : > { %v1546_v57 = vpop.f32.mrf.mxu1 }
 0x378   : > { %v1547_v58 = vadd.f32 %v1546_v57, %v3538_v56 }
 0x37a   : > { %v1557_v59 = vsel %vm1553_vm0, %v1547_v58, -inf }
 0x37b   : > { %1558 = vmax.xlane.f32.xlu2 %v1557_v59 }
 0x37f   : > { %v1549_v60 = vpop.f32.mrf.mxu1 }
 0x380   : > { %v1550_v63 = vadd.f32 %v1549_v60, %v3545_v62 }
 0x382   : > { %v1560_v0 = vsel %vm1553_vm0, %v1550_v63, -inf }
 0x387   : > { %v1551_v61 = vpop.f32.mrf.mxu1 }
 0x393   : > { %1629 = vrot.lane.b32.xlu2 %v3512_v38, %s3155_s11  ;;  %s3165_s11 = smov 8  }
 0x3bc   : > { %1561 = vmax.xlane.f32.xlu2 %v1560_v0 }
 0x3e6   : > { %v1556_v1 = vpop.xlane.xlu2 %1555 }
 0x3e7   : > { %v1563_v2 = vsub.f32 %v1545_v54, %v1556_v1 }
 0x3e9   : > { %v1566_v3 = vmul.f32 1.442695, %v1563_v2 }
 0x3eb   : > { %2984 = vpow2.f32 %v1566_v3 }
 0x3ee   : > { %v1559_v4 = vpop.xlane.xlu2 %1558 }
 0x3ef   : > { %v1564_v5 = vsub.f32 %v1547_v58, %v1559_v4 }
 0x3f1   : > { %v2985_v6 = vpop.eup %2984  ;;  %v1568_v7 = vmul.f32 1.442695, %v1564_v5 }
 0x3f2   : > { %v1572_v8 = vsel %vm1553_vm0, %v2985_v6, 0.0 }
 0x3f3   : > { %2986 = vpow2.f32 %v1568_v7  ;;  %1573 = vadd.xlane.f32.xlu2 %v1572_v8 }
 0x3f6   : > { %v1630_v9 = vpop.permute.xlu2 %1629 }
 0x3f7   : > { %v1640_v10 = vsel %vm1522_vm14, %v1630_v9, 0 }
 0x3f8   : > { %1652 = vmatpush.bf16.xpose.msra.mxu3 %v1640_v10 }
 0x3f9   : > { %v2987_v11 = vpop.eup %2986 }
 0x3fa   : > { %v1575_v12 = vsel %vm1553_vm0, %v2987_v11, 0.0 }
 0x3fb   : > { %1576 = vadd.xlane.f32.xlu1 %v1575_v12 }
 0x3ff   : > { %2769 = vmatmul.msk.bf16.vlgmr.msra.gmra.mxu3 %vm1522_vm14, %v1626_v13 }
 0x40b   : > { %1752 = vrot.lane.b32.xlu2 %v3515_v41, %s3158_s9 }
 0x413   : > { %1627 = vrot.lane.b32.xlu2 %v3515_v41, %s3157_s28  ;;  %s3167_s28 = smov 24  }
 0x414   : > { %1873 = vrot.lane.b32.xlu1 %v3515_v41, %s3159_s22 }
 0x41b   : > { %1750 = vrot.lane.b32.xlu2 %v3512_v38, %s3158_s9  ;;  %s3899_s9 = sld [smem:[#allocation30_spill]] }
 0x41c   : > { %1867 = vrot.lane.b32.xlu1 %v3512_v38, %s3160_s5 }
 0x423   : > { %1871 = vrot.lane.b32.xlu2 %v3512_v38, %s3159_s22  ;;  %s3900_s22 = scalar_lea.vmem %s3899_s9, %s3929_s29 }
 0x42b   : > { %1746 = vrot.lane.b32.xlu2 %v3512_v38, %s3161_s10 }
 0x42f   : > { %v1562_v14 = vpop.xlane.xlu2 %1561 }
 0x430   : > { %v1565_v15 = vsub.f32 %v1550_v63, %v1562_v14 }
 0x432   : > { %v1570_v16 = vmul.f32 1.442695, %v1565_v15 }
 0x433   : > { %1869 = vrot.lane.b32.xlu2 %v3515_v41, %s3160_s5 }
 0x434   : > { %2988 = vpow2.f32 %v1570_v16 }
 0x43a   : > { %v2989_v17 = vpop.eup %2988 }
 0x43b   : > { %v1578_v18 = vsel %vm1553_vm0, %v2989_v17, 0.0 }
 0x43c   : > { %1579 = vadd.xlane.f32.xlu0 %v1578_v18 }
 0x450   : > { %1748 = vrot.lane.b32.xlu0 %v3515_v41, %s3161_s10  ;;  %s3901_s10 = scalar_lea.vmem %s3820_s12, %s3929_s29 }
 0x466   : > { %v1574_v19 = vpop.xlane.xlu2 %1573 }
 0x467   : > { %2990 = vrcp.f32 %v1574_v19 }
 0x46d   : > { %v2991_v26 = vpop.eup %2990 }
 0x46e   : > { %v1577_v22 = vpop.xlane.xlu1 %1576  ;;  %v1753_v23 = vpop.permute.xlu2 %1752  ;;  %v1584_v29 = vmul.f32 %v2991_v26, %v2985_v6 }
 0x46f   : > { %2992 = vrcp.f32 %v1577_v22  ;;  %v1764_v25 = vsel %vm1522_vm14, %v1753_v23, 0 }
 0x470   : > { %1772 = vmatpush.bf16.xpose.msrb.mxu2 %v1764_v25 }
 0x475   : > { %v2993_v27 = vpop.eup %2992 }
 0x476   : > { %v1628_v28 = vpop.permute.xlu2 %1627  ;;  %v1585_v30 = vmul.f32 %v2993_v27, %v2987_v11 }
 0x477   : > { %2770 = vmatmul.msk.bf16.gmra.mxu3 %vm1522_vm14, %v1628_v28 }
 0x478   : > { %v1587_v31 = vpack.c.bf16 %v1585_v30, %v1584_v29 }
 0x47a   : > { %2767 = vmatmul.msk.bf16.vlgmr.msra.gmra.mxu2 %vm1553_vm0, %v1587_v31 }
 0x47e   : > { %v1751_v33 = vpop.permute.xlu2 %1750 }
 0x47f   : > { %v1761_v34 = vsel %vm1522_vm14, %v1751_v33, 0 }
 0x480   : > { %1773 = vmatpush.bf16.xpose.msrb.mxu2 %v1761_v34 }
 0x482   : > { %v1654_v35 = vpop.f32.mrf.mxu3 }
 0x483   : > { %v1655_v36 = vadd.f32 %v1654_v35, %v3533_v52 }
 0x485   : > { %v1663_v37 = vsel %vm1553_vm0, %v1655_v36, -inf }
 0x486   : > { %v1874_v39 = vpop.permute.xlu1 %1873  ;;  %1664 = vmax.xlane.f32.xlu1 %v1663_v37  ;;  %v1872_v44 = vpop.permute.xlu2 %1871 }
 0x487   : > { %v1885_v40 = vsel %vm1522_vm14, %v1874_v39, 0  ;;  %v1882_v46 = vsel %vm1522_vm14, %v1872_v44, 0 }
 0x488   : > { %1893 = vmatpush.bf16.xpose.msrb.mxu3 %v1885_v40 }
 0x48a   : > { %v1656_v42 = vpop.f32.mrf.mxu3 }
 0x48b   : > { %v1657_v43 = vadd.f32 %v1656_v42, %v3538_v56 }
 0x48d   : > { %v1666_v45 = vsel %vm1553_vm0, %v1657_v43, -inf }
 0x48e   : > { %1667 = vmax.xlane.f32.xlu2 %v1666_v45  ;;  %v1868_v47 = vpop.permute.xlu1 %1867  ;;  %v1747_v48 = vpop.permute.xlu2 %1746 }
 0x490   : > { %1894 = vmatpush.bf16.xpose.msrb.mxu3 %v1882_v46 }
 0x496   : > { %v1870_v49 = vpop.permute.xlu2 %1869 }
 0x497   : > { %2777 = vmatmul.msk.bf16.vlgmr.msrb.gmra.mxu3 %vm1522_vm14, %v1868_v47 }
 0x4a7   : > { %2778 = vmatmul.msk.bf16.gmra.mxu3 %vm1522_vm14, %v1870_v49 }
 0x4af   : > { %v1580_v50 = vpop.xlane.xlu0 %1579 }
 0x4b0   : > { %2994 = vrcp.f32 %v1580_v50 }
 0x4b6   : > { %v2995_v51 = vpop.eup %2994 }
 0x4b7   : > { %v1586_v53 = vmul.f32 %v2995_v51, %v2989_v17 }
 0x4b9   : > { %v1588_v54 = vpack.c.bf16 %v1586_v53, %v1586_v53 }
 0x4bb   : > { %2768 = vmatmul.msk.bf16.gmra.mxu2 %vm1553_vm0, %v1588_v54 }
 0x4c2   : > { %v1749_v55 = vpop.permute.xlu0 %1748 }
 0x4cb   : > { %2773 = vmatmul.msk.bf16.vlgmr.msrb.gmra.mxu2 %vm1522_vm14, %v1747_v48 }
 0x4db   : > { %2774 = vmatmul.msk.bf16.gmra.mxu2 %vm1522_vm14, %v1749_v55 }
 0x4f9   : > { %v1665_v57 = vpop.xlane.xlu1 %1664 }
 0x4fa   : > { %v1672_v58 = vsub.f32 %v1655_v36, %v1665_v57  ;;  %v1659_v59 = vpop.f32.mrf.mxu3 }
 0x4fb   : > { %v1660_v60 = vadd.f32 %v1659_v59, %v3545_v62 }
 0x4fc   : > { %v1675_v61 = vmul.f32 1.442695, %v1672_v58 }
 0x4fd   : > { %v1613_v63 = vpop.f32.mrf.mxu2  ;;  %v1669_v0 = vsel %vm1553_vm0, %v1660_v60, -inf }
 0x4fe   : > { %2996 = vpow2.f32 %v1675_v61  ;;  %1622 = vst.msk [vmem:[#allocation3] sm:$0xff] %vm1522_vm14, %v1613_v63  ;;  %1670 = vmax.xlane.f32.xlu0 %v1669_v0 }
 0x501   : > { %v1668_v5 = vpop.xlane.xlu2 %1667 }
 0x502   : > { %v1661_v1 = vpop.f32.mrf.mxu3  ;;  %v1673_v6 = vsub.f32 %v1657_v43, %v1668_v5 }
 0x504   : > { %v3582_v2 = vpop.eup %2996  ;;  %v1677_v7 = vmul.f32 1.442695, %v1673_v6 }
 0x505   : > { %v1615_v3 = vpop.f32.mrf.mxu2  ;;  %v1681_v4 = vsel %vm1553_vm0, %v3582_v2, 0.0 }
 0x506   : > { %1623 = vst.msk [vmem:[#allocation3 + $0x8] sm:$0xff] %vm1522_vm14, %v1615_v3  ;;  %1682 = vadd.xlane.f32.xlu0 %v1681_v4  ;;  %2998 = vpow2.f32 %v1677_v7 }
 0x50c   : > { %v3590_v11 = vpop.eup %2998 }
 0x50d   : > { %v1684_v15 = vsel %vm1553_vm0, %v3590_v11, 0.0 }
 0x51a   : > { %v1896_v8 = vpop.f32.mrf.mxu3  ;;  %1698 = vrot.lane.b32.xlu0 %v3512_v38, %s3162_s2 }
 0x51b   : > { %v1897_v9 = vadd.f32 %v1896_v8, %v3533_v52 }
 0x51d   : > { %v1905_v10 = vsel %vm1553_vm0, %v1897_v9, -inf }
 0x51e   : > { %1906 = vmax.xlane.f32.xlu1 %v1905_v10 }
 0x522   : > { %v1898_v12 = vpop.f32.mrf.mxu3 }
 0x523   : > { %v1899_v13 = vadd.f32 %v1898_v12, %v3538_v56 }
 0x525   : > { %v1908_v14 = vsel %vm1553_vm0, %v1899_v13, -inf }
 0x526   : > { %1909 = vmax.xlane.f32.xlu2 %v1908_v14  ;;  %1685 = vadd.xlane.f32.xlu1 %v1684_v15 }
 0x52a   : > { %v1901_v16 = vpop.f32.mrf.mxu3 }
 0x52b   : > { %v1902_v36 = vadd.f32 %v1901_v16, %v3545_v62 }
 0x52d   : > { %v1911_v37 = vsel %vm1553_vm0, %v1902_v36, -inf }
 0x532   : > { %v1903_v17 = vpop.f32.mrf.mxu3 }
 0x53e   : > { %v1618_v18 = vpop.f32.mrf.mxu2 }
 0x53f   : > { %1624 = vst.msk [vmem:[#allocation3 + $0x10] sm:$0xff] %vm1522_vm14, %v1618_v18  ;;  %vm2216_vm14 = vcmask 523264  }
 0x546   : > { %v1620_v19 = vpop.f32.mrf.mxu2 }
 0x54e   : > { %v1775_v22 = vpop.f32.mrf.mxu2 }
 0x54f   : > { %v1776_v23 = vadd.f32 %v1775_v22, %v3533_v52 }
 0x551   : > { %v1784_v25 = vsel %vm1553_vm0, %v1776_v23, -inf }
 0x552   : > { %1785 = vmax.xlane.f32.xlu1 %v1784_v25 }
 0x556   : > { %v1777_v26 = vpop.f32.mrf.mxu2 }
 0x557   : > { %v1778_v27 = vadd.f32 %v1777_v26, %v3538_v56 }
 0x559   : > { %v1787_v28 = vsel %vm1553_vm0, %v1778_v27, -inf }
 0x55a   : > { %1788 = vmax.xlane.f32.xlu2 %v1787_v28 }
 0x55e   : > { %v1780_v29 = vpop.f32.mrf.mxu2 }
 0x566   : > { %v1782_v30 = vpop.f32.mrf.mxu2 }
 0x571   : > { %v1671_v31 = vpop.xlane.xlu0 %1670 }
 0x572   : > { %v1674_v33 = vsub.f32 %v1660_v60, %v1671_v31  ;;  %1700 = vrot.lane.b32.xlu2 %v3515_v41, %s3162_s2 }
 0x574   : > { %v1679_v34 = vmul.f32 1.442695, %v1674_v33 }
 0x576   : > { %3000 = vpow2.f32 %v1679_v34 }
 0x579   : > { %v1683_v55 = vpop.xlane.xlu0 %1682 }
 0x57c   : > { %v3001_v35 = vpop.eup %3000 }
 0x57d   : > { %v1687_v52 = vsel %vm1553_vm0, %v3001_v35, 0.0 }
 0x57e   : > { %1688 = vadd.xlane.f32.xlu1 %v1687_v52 }
 0x586   : > { %1912 = vmax.xlane.f32.xlu1 %v1911_v37 }
 0x58c   : > { %v1699_v7 = vpop.permute.xlu0 %1698 }
 0x591   : > { %v1907_v56 = vpop.xlane.xlu1 %1906 }
 0x592   : > { %v1914_v39 = vsub.f32 %v1897_v9, %v1907_v56  ;;  %v1781_v9 = vadd.f32 %v1780_v29, %v3545_v62 }
 0x594   : > { %v1917_v40 = vmul.f32 1.442695, %v1914_v39  ;;  %v1790_v10 = vsel %vm1553_vm0, %v1781_v9, -inf }
 0x596   : > { %3002 = vpow2.f32 %v1917_v40 }
 0x599   : > { %v1910_v42 = vpop.xlane.xlu2 %1909  ;;  %v1686_v49 = vpop.xlane.xlu1 %1685 }
 0x59a   : > { %v1915_v43 = vsub.f32 %v1899_v13, %v1910_v42 }
 0x59c   : > { %v3605_v44 = vpop.eup %3002  ;;  %v1919_v45 = vmul.f32 1.442695, %v1915_v43 }
 0x59d   : > { %v1923_v46 = vsel %vm1553_vm0, %v3605_v44, 0.0 }
 0x59e   : > { %3004 = vpow2.f32 %v1919_v45  ;;  %1924 = vadd.xlane.f32.xlu1 %v1923_v46 }
 0x5a4   : > { %v3005_v47 = vpop.eup %3004 }
 0x5a5   : > { %v1926_v48 = vsel %vm1553_vm0, %v3005_v47, 0.0 }
 0x5a6   : > { %1927 = vadd.xlane.f32.xlu1 %v1926_v48 }
 0x5bf   : > { %1821 = vrot.lane.b32.xlu1 %v3515_v41, %s3163_s14 }
 0x5c5   : > { %v1786_v50 = vpop.xlane.xlu1 %1785 }
 0x5c6   : > { %v1793_v51 = vsub.f32 %v1776_v23, %v1786_v50 }
 0x5c8   : > { %v1796_v53 = vmul.f32 1.442695, %v1793_v51 }
 0x5ca   : > { %3006 = vpow2.f32 %v1796_v53 }
 0x5cb   : > { %3008 = vrcp.f32 %v1686_v49 }
 0x5cc   : > { %3010 = vrcp.f32 %v1683_v55 }
 0x5cd   : > { %v1789_v54 = vpop.xlane.xlu2 %1788 }
 0x5ce   : > { %v1794_v57 = vsub.f32 %v1778_v27, %v1789_v54 }
 0x5d0   : > { %v3007_v58 = vpop.eup %3006  ;;  %v1798_v59 = vmul.f32 1.442695, %v1794_v57 }
 0x5d1   : > { %v1802_v60 = vsel %vm1553_vm0, %v3007_v58, 0.0  ;;  %v3009_v61 = vpop.eup %3008 }
 0x5d2   : > { %3012 = vpow2.f32 %v1798_v59  ;;  %1803 = vadd.xlane.f32.xlu0 %v1802_v60  ;;  %v3011_v1 = vpop.eup %3010  ;;  %v1694_v4 = vmul.f32 %v3009_v61, %v3590_v11 }
 0x5d3   : > { %v1693_v6 = vmul.f32 %v3011_v1, %v3582_v2 }
 0x5d5   : > { %v1701_v63 = vpop.permute.xlu2 %1700  ;;  %v1696_v8 = vpack.c.bf16 %v1694_v4, %v1693_v6 }
 0x5d6   : > { %v1710_v0 = vsel %vm1600_vm15, %v1701_v63, 0 }
 0x5d7   : > { %1718 = vmatpush.bf16.msrb.mxu0 %v1710_v0 }
 0x5d8   : > { %v3013_v3 = vpop.eup %3012 }
 0x5d9   : > { %v1805_v5 = vsel %vm1553_vm0, %v3013_v3, 0.0 }
 0x5da   : > { %1806 = vadd.xlane.f32.xlu2 %v1805_v5 }
 0x5db   : > { %1719 = vmatpush.bf16.msrb.mxu0 %v1699_v7 }
 0x5de   : > { %2771 = vmatmul.msk.bf16.vlgmr.msrb.gmra.mxu0 %vm1553_vm0, %v1696_v8  ;;  %v2876_v8 = vld [vmem:[%s3385_s0 + $0x8] sm:$0xff] }
 0x5df   : > { %2021 = vmatpush.bf16.msra.mxu2 %v2876_v8 }
 0x5e6   : > { %1942 = vrot.lane.b32.xlu0 %v3515_v41, %s3164_s7 }
 0x5e9   : > { %1791 = vmax.xlane.f32.xlu1 %v1790_v10 }
 0x5f1   : > { %v1689_v12 = vpop.xlane.xlu1 %1688 }
 0x5f2   : > { %3014 = vrcp.f32 %v1689_v12  ;;  %1819 = vrot.lane.b32.xlu2 %v3512_v38, %s3163_s14 }
 0x5f8   : > { %v3015_v2 = vpop.eup %3014 }
 0x5f9   : > { %v1695_v11 = vmul.f32 %v3015_v2, %v3001_v35  ;;  %v1913_v13 = vpop.xlane.xlu1 %1912 }
 0x5fa   : > { %v1916_v15 = vsub.f32 %v1902_v36, %v1913_v13 }
 0x5fb   : > { %v1697_v14 = vpack.c.bf16 %v1695_v11, %v1695_v11 }
 0x5fc   : > { %v1921_v16 = vmul.f32 1.442695, %v1916_v15 }
 0x5fd   : > { %2772 = vmatmul.msk.bf16.gmra.mxu0 %vm1553_vm0, %v1697_v14 }
 0x5fe   : > { %3016 = vpow2.f32 %v1921_v16 }
 0x602   : > { %1940 = vrot.lane.b32.xlu1 %v3512_v38, %s3164_s7  ;;  %s3902_s7 = scalar_lea.vmem %s3821_s13, %s3929_s29 }
 0x604   : > { %v3017_v41 = vpop.eup %3016 }
 0x605   : > { %v1929_v62 = vsel %vm1553_vm0, %v3017_v41, 0.0 }
 0x610   : > { %1930 = vadd.xlane.f32.xlu0 %v1929_v62 }
 0x611   : > { %v1925_v17 = vpop.xlane.xlu1 %1924 }
 0x612   : > { %3018 = vrcp.f32 %v1925_v17 }
 0x618   : > { %v3019_v19 = vpop.eup %3018 }
 0x619   : > { %v1928_v18 = vpop.xlane.xlu1 %1927  ;;  %v1935_v23 = vmul.f32 %v3019_v19, %v3605_v44 }
 0x61a   : > { %3020 = vrcp.f32 %v1928_v18  ;;  %v2969_v18 = vld [vmem:[%s3900_s22] ss:$0 sm:$0xff] }
 0x620   : > { %v3021_v22 = vpop.eup %3020 }
 0x621   : > { %v1936_v25 = vmul.f32 %v3021_v22, %v3005_v47 }
 0x623   : > { %v1938_v26 = vpack.c.bf16 %v1936_v25, %v1935_v23 }
 0x631   : > { %v1822_v27 = vpop.permute.xlu1 %1821 }
 0x632   : > { %v1831_v28 = vsel %vm1600_vm15, %v1822_v27, 0 }
 0x633   : > { %1839 = vmatpush.bf16.msrb.mxu1 %v1831_v28 }
 0x645   : > { %v1804_v38 = vpop.xlane.xlu0 %1803 }
 0x646   : > { %3022 = vrcp.f32 %v1804_v38 }
 0x64c   : > { %v3023_v30 = vpop.eup %3022 }
 0x64d   : > { %v1807_v29 = vpop.xlane.xlu2 %1806  ;;  %v1814_v33 = vmul.f32 %v3023_v30, %v3007_v58 }
 0x64e   : > { %3024 = vrcp.f32 %v1807_v29 }
 0x654   : > { %v3025_v31 = vpop.eup %3024 }
 0x655   : > { %v1815_v34 = vmul.f32 %v3025_v31, %v3013_v3  ;;  %v1820_v35 = vpop.permute.xlu2 %1819 }
 0x656   : > { %1840 = vmatpush.bf16.msrb.mxu1 %v1820_v35 }
 0x657   : > { %v1817_v52 = vpack.c.bf16 %v1815_v34, %v1814_v33 }
 0x658   : > { %v1943_v36 = vpop.permute.xlu0 %1942 }
 0x659   : > { %v1952_v37 = vsel %vm1600_vm15, %v1943_v36, 0  ;;  %2775 = vmatmul.msk.bf16.vlgmr.msrb.gmra.mxu1 %vm1553_vm0, %v1817_v52 }
 0x65a   : > { %1960 = vmatpush.bf16.msra.mxu0 %v1952_v37 }
 0x65b   : > { %v1721_v56 = vpop.f32.mrf.mxu0 }
 0x65c   : > { %v1792_v39 = vpop.xlane.xlu1 %1791  ;;  %1733 = vrot.lane.b32.xlu2 %v1721_v56, %s3165_s11 }
 0x65d   : > { %v1795_v40 = vsub.f32 %v1781_v9, %v1792_v39  ;;  %v2875_v9 = vld [vmem:[%s3385_s0] sm:$0xff]  ;;  %s3904_s0 = sld [smem:[#allocation11_spill]] }
 0x65e   : > { %2022 = vmatpush.bf16.msra.mxu2 %v2875_v9 }
 0x65f   : > { %v1800_v42 = vmul.f32 1.442695, %v1795_v40 }
 0x661   : > { %3026 = vpow2.f32 %v1800_v42 }
 0x663   : > { %v1723_v43 = vpop.f32.mrf.mxu0  ;;  %p2355_p10 = scmp.eq.s32.totalorder %s3904_s0, 1 }
 0x664   : > { %1735 = vrot.lane.b32.xlu2 %v1723_v43, %s3165_s11 }
 0x665   : > { %p3725_p12 = pnand %p2356_p11, %p2355_p10 }
 0x666   : > { %s3908_s14 = sld [smem:[#allocation32_spill]] (!%p3725_p12) }
 0x667   : > { %v3027_v44 = vpop.eup %3026  ;;  %s3911_s22 = sld [smem:[#allocation35_spill]] (!%p3725_p12) }
 0x668   : > { %v1808_v45 = vsel %vm1553_vm0, %v3027_v44, 0.0 }
 0x669   : > { %1809 = vadd.xlane.f32.xlu1 %v1808_v45 }
 0x674   : > { %v1941_v46 = vpop.permute.xlu1 %1940 }
 0x675   : > { %1961 = vmatpush.bf16.msra.mxu0 %v1941_v46 }
 0x678   : > { %2779 = vmatmul.msk.bf16.vlgmr.msra.gmra.mxu0 %vm1553_vm0, %v1938_v26 }
 0x67a   : > { %v1726_v47 = vpop.f32.mrf.mxu0 }
 0x67b   : > { %1737 = vrot.lane.b32.xlu0 %v1726_v47, %s3165_s11  ;;  %v2878_v47 = vld [vmem:[%s3402_s24 + $0x8] sm:$0xff] }
 0x67c   : > { %2153 = vmatpush.bf16.msra.mxu1 %v2878_v47 }
 0x682   : > { %v1728_v48 = vpop.f32.mrf.mxu0 }
 0x683   : > { %v1931_v49 = vpop.xlane.xlu0 %1930 }
 0x684   : > { %3028 = vrcp.f32 %v1931_v49 }
 0x68a   : > { %v3029_v50 = vpop.eup %3028 }
 0x68b   : > { %v1937_v51 = vmul.f32 %v3029_v50, %v3017_v41  ;;  %v2877_v50 = vld [vmem:[%s3402_s24] sm:$0xff] }
 0x68c   : > { %2154 = vmatpush.bf16.msra.mxu1 %v2877_v50 }
 0x68d   : > { %v1939_v53 = vpack.c.bf16 %v1937_v51, %v1937_v51 }
 0x68f   : > { %2780 = vmatmul.msk.bf16.gmra.mxu0 %vm1553_vm0, %v1939_v53 }
 0x6b6   : > { %v1734_v54 = vpop.permute.xlu2 %1733 }
 0x6b7   : > { %1743 = vst.msk [vmem:[#allocation3] sm:$0xff] %vm1742_vm1, %v1734_v54 }
 0x6be   : > { %v1736_v55 = vpop.permute.xlu2 %1735 }
 0x6bf   : > { %1744 = vst.msk [vmem:[#allocation3 + $0x8] sm:$0xff] %vm1742_vm1, %v1736_v55 }
 0x6d6   : > { %v1842_v57 = vpop.f32.mrf.mxu1 }
 0x6d7   : > { %1854 = vrot.lane.b32.xlu2 %v1842_v57, %s3166_s27 }
 0x6dc   : > { %v1810_v58 = vpop.xlane.xlu1 %1809 }
 0x6dd   : > { %3030 = vrcp.f32 %v1810_v58 }
 0x6de   : > { %v1844_v59 = vpop.f32.mrf.mxu1 }
 0x6df   : > { %1856 = vrot.lane.b32.xlu2 %v1844_v59, %s3166_s27 }
 0x6e3   : > { %v3031_v60 = vpop.eup %3030 }
 0x6e4   : > { %v1816_v61 = vmul.f32 %v3031_v60, %v3027_v44 }
 0x6e6   : > { %v1818_v63 = vpack.c.bf16 %v1816_v61, %v1816_v61 }
 0x6e8   : > { %2776 = vmatmul.msk.bf16.gmra.mxu1 %vm1553_vm0, %v1818_v63 }
 0x6ed   : > { %v1738_v0 = vpop.permute.xlu0 %1737 }
 0x6ee   : > { %1745 = vst.msk [vmem:[#allocation3 + $0x10] sm:$0xff] %vm1742_vm1, %v1738_v0 }
 0x6f5   : > { %v1963_v1 = vpop.f32.mrf.mxu0 }
 0x6f6   : > { %1975 = vrot.lane.b32.xlu1 %v1963_v1, %s3167_s28 }
 0x6fd   : > { %v1965_v3 = vpop.f32.mrf.mxu0 }
 0x6fe   : > { %1977 = vrot.lane.b32.xlu2 %v1965_v3, %s3167_s28 }
 0x70c   : > { %v1968_v4 = vpop.f32.mrf.mxu0 }
 0x714   : > { %v1970_v5 = vpop.f32.mrf.mxu0 }
 0x731   : > { %v1855_v6 = vpop.permute.xlu2 %1854 }
 0x732   : > { %1864 = vst.msk [vmem:[#allocation3] sm:$0xff] %vm1863_vm2, %v1855_v6 }
 0x739   : > { %v1857_v7 = vpop.permute.xlu2 %1856 }
 0x73a   : > { %1865 = vst.msk [vmem:[#allocation3 + $0x8] sm:$0xff] %vm1863_vm2, %v1857_v7  ;;  %v2970_v7 = vld [vmem:[%s3901_s10] ss:$0 sm:$0xff] }
 0x758   : > { %v1978_v10 = vpop.permute.xlu2 %1977 }
 0x759   : > { %1986 = vst.msk [vmem:[#allocation3 + $0x8] sm:$0xff] %vm1984_vm4, %v1978_v10 }
 0x760   : > { %v1989_v14 = vld [vmem:[#allocation3 + $0x8] sm:$0xff] }
 0x765   : > { %v1847_v12 = vpop.f32.mrf.mxu1 }
 0x766   : > { %1858 = vrot.lane.b32.xlu2 %v1847_v12, %s3166_s27  ;;  %v2971_v12 = vld [vmem:[%s3902_s7] ss:$0 sm:$0xff]  ;;  %s3903_s27 = scalar_lea.vmem %s3823_s15, %s3929_s29 }
 0x768   : > { %v1976_v2 = vpop.permute.xlu1 %1975 }
 0x769   : > { %1985 = vst.msk [vmem:[#allocation3] sm:$0xff] %vm1984_vm4, %v1976_v2 }
 0x76d   : > { %v1849_v11 = vpop.f32.mrf.mxu1 }
 0x76e   : > { %1979 = vrot.lane.b32.xlu2 %v1968_v4, %s3167_s28 }
 0x770   : > { %v1988_v13 = vld [vmem:[#allocation3] sm:$0xff] }
 0x771   : > { %v1991_v15 = vpack.c.bf16 %v1989_v14, %v1988_v13 }
 0x773   : > { %2789 = vmatmul.msk.bf16.vlgmr.msra.gmra.mxu2 %vm1379_vm3, %v1991_v15 }
 0x7c0   : > { %v1859_v16 = vpop.permute.xlu2 %1858 }
 0x7c1   : > { %1866 = vst.msk [vmem:[#allocation3 + $0x10] sm:$0xff] %vm1863_vm2, %v1859_v16 }
 0x7c8   : > { %v1980_v41 = vpop.permute.xlu2 %1979 }
 0x7c9   : > { %1987 = vst.msk [vmem:[#allocation3 + $0x10] sm:$0xff] %vm1984_vm4, %v1980_v41  ;;  %v2884_v41 = vld [vmem:[%s3421_s23 + $0x8] sm:$0xff] }
 0x7ca   : > { %2264 = vmatpush.bf16.msrb.mxu1 %v2884_v41 }
 0x7d0   : > { %v1990_v62 = vld [vmem:[#allocation3 + $0x10] sm:$0xff] }
 0x7d1   : > { %v1992_v17 = vpack.c.bf16 %v1990_v62, %v1990_v62  ;;  %v2883_v62 = vld [vmem:[%s3421_s23] sm:$0xff] }
 0x7d2   : > { %2265 = vmatpush.bf16.msrb.mxu1 %v2883_v62  ;;  %v2974_v62 = vld [vmem:[%s1265_s25] ss:$0 sm:$0xff]  ;;  %s3907_s25 = scalar_lea.vmem %s3829_s21, %s3929_s29 }
 0x7d3   : > { %2790 = vmatmul.msk.bf16.gmra.mxu2 %vm1379_vm3, %v1992_v17 }
 0x7f6   : > { %v2024_v19 = vpop.f32.mrf.mxu2 }
 0x7f7   : > { %v2033_v22 = vadd.f32 %v2024_v19, %v3462_v20 }
 0x7f9   : > { %v3656_v23 = vadd.f32 %v2969_v18, %v2033_v22 }
 0x7fb   : > { %v2045_v25 = vsel %vm1379_vm3, %v3656_v23, 0.0 }
 0x7fc   : > { %2046 = vadd.xlane.f32.xlu1 %v2045_v25 }
 0x7fe   : > { %v2026_v26 = vpop.f32.mrf.mxu2 }
 0x7ff   : > { %v2034_v27 = vadd.f32 %v2026_v26, %v3470_v24 }
 0x801   : > { %v3661_v28 = vadd.f32 %v2969_v18, %v2034_v27 }
 0x803   : > { %v2048_v38 = vsel %vm1379_vm3, %v3661_v28, 0.0 }
 0x804   : > { %2049 = vadd.xlane.f32.xlu2 %v2048_v38 }
 0x856   : > { %v2029_v29 = vpop.f32.mrf.mxu2 }
 0x857   : > { %v2035_v30 = vadd.f32 %v2029_v29, %v3464_v21 }
 0x859   : > { %v3666_v31 = vadd.f32 %v2969_v18, %v2035_v30 }
 0x85b   : > { %v2051_v20 = vsel %vm1379_vm3, %v3666_v31, 0.0 }
 0x85c   : > { %2052 = vadd.xlane.f32.xlu0 %v2051_v20 }
 0x85e   : > { %v2031_v33 = vpop.f32.mrf.mxu2 }
 0x86f   : > { %v2047_v34 = vpop.xlane.xlu1 %2046 }
 0x870   : > { %v2054_v35 = vmul.f32 %v2047_v34, %v3474_v32 }
 0x872   : > { %v2057_v24 = vsub.f32 %v3656_v23, %v2054_v35  ;;  %v2882_v35 = vld [vmem:[%s3412_s30 + $0x18] sm:$0xff] }
 0x873   : > { %2224 = vmatpush.bf16.msra.mxu3 %v2882_v35 }
 0x874   : > { %v2060_v52 = vmul.f32 %v2057_v24, %v2057_v24 }
 0x876   : > { %v2063_v36 = vsel %vm1379_vm3, %v2060_v52, 0.0  ;;  %v2880_v52 = vld [vmem:[%s3412_s30 + $0x8] sm:$0xff] }
 0x877   : > { %2064 = vadd.xlane.f32.xlu2 %v2063_v36  ;;  %v2050_v37 = vpop.xlane.xlu2 %2049  ;;  %v2972_v36 = vld [vmem:[%s3903_s27] ss:$0 sm:$0xff]  ;;  %s3909_s27 = sld [smem:[#allocation34_spill]] (!%p3725_p12) }
 0x878   : > { %v2055_v21 = vmul.f32 %v2050_v37, %v3474_v32  ;;  %v2879_v37 = vld [vmem:[%s3412_s30] sm:$0xff] }
 0x87a   : > { %v2058_v56 = vsub.f32 %v3661_v28, %v2055_v21 }
 0x87c   : > { %v2061_v39 = vmul.f32 %v2058_v56, %v2058_v56 }
 0x87e   : > { %v2066_v40 = vsel %vm1379_vm3, %v2061_v39, 0.0 }
 0x87f   : > { %2067 = vadd.xlane.f32.xlu1 %v2066_v40 }
 0x8cf   : > { %v2053_v42 = vpop.xlane.xlu0 %2052 }
 0x8d0   : > { %v2056_v43 = vmul.f32 %v2053_v42, %v3474_v32 }
 0x8d2   : > { %v3678_v44 = vsub.f32 %v3666_v31, %v2056_v43 }
 0x8d4   : > { %v2062_v45 = vmul.f32 %v3678_v44, %v3678_v44 }
 0x8d6   : > { %v2069_v46 = vsel %vm1379_vm3, %v2062_v45, 0.0 }
 0x8d7   : > { %2070 = vadd.xlane.f32.xlu0 %v2069_v46 }
 0x8ea   : > { %v2065_v48 = vpop.xlane.xlu2 %2064 }
 0x8eb   : > { %v2072_v49 = vmul.f32 %v2065_v48, %v3474_v32 }
 0x8ed   : > { %v2075_v51 = vadd.f32 1e-05, %v2072_v49 }
 0x8ef   : > { %3032 = vrsqrt.f32 %v2075_v51  ;;  %vm2084_vm6 = vweird.f32 %v2075_v51 }
 0x8f2   : > { %v2068_v53 = vpop.xlane.xlu1 %2067 }
 0x8f3   : > { %v2073_v54 = vmul.f32 %v2068_v53, %v3474_v32 }
 0x8f5   : > { %v3033_v55 = vpop.eup %3032  ;;  %v2076_v57 = vadd.f32 1e-05, %v2073_v54 }
 0x8f6   : > { %v2079_v58 = vmul.f32 %v3033_v55, %v2075_v51  ;;  %vm2085_vm5 = vweird.f32 %v3033_v55 }
 0x8f7   : > { %3034 = vrsqrt.f32 %v2076_v57  ;;  %vm2086_vm7 = vmor %vm2084_vm6, %vm2085_vm5  ;;  %vm2094_vm9 = vweird.f32 %v2076_v57 }
 0x8f8   : > { %v2080_v59 = vmul.f32 %v3033_v55, %v2079_v58 }
 0x8fa   : > { %v2081_v60 = vmul.f32 0.5, %v2080_v59 }
 0x8fc   : > { %v2082_v61 = vsub.f32 1.5, %v2081_v60 }
 0x8fd   : > { %v3035_v63 = vpop.eup %3034 }
 0x8fe   : > { %v2083_v0 = vmul.f32 %v3033_v55, %v2082_v61  ;;  %v2089_v1 = vmul.f32 %v3035_v63, %v2076_v57  ;;  %vm2095_vm8 = vweird.f32 %v3035_v63 }
 0x8ff   : > { %vm2096_vm10 = vmor %vm2094_vm9, %vm2095_vm8 }
 0x900   : > { %v2090_v3 = vmul.f32 %v3035_v63, %v2089_v1  ;;  %v2087_v4 = vsel %vm2086_vm7, %v3033_v55, %v2083_v0  ;;  %v2888_v0 = vld [vmem:[%s3430_s8 + $0x18] sm:$0xff]  ;;  %v2887_v1 = vld [vmem:[%s3430_s8 + $0x10] sm:$0xff] }
 0x901   : > { %v2108_v8 = vmul.f32 %v2087_v4, %v2057_v24  ;;  %v2881_v24 = vld [vmem:[%s3412_s30 + $0x10] sm:$0xff]  ;;  %v2885_v4 = vld [vmem:[%s3430_s8] sm:$0xff] }
 0x902   : > { %v2091_v5 = vmul.f32 0.5, %v2090_v3  ;;  %2225 = vmatpush.bf16.msra.mxu3 %v2881_v24  ;;  %v2886_v3 = vld [vmem:[%s3430_s8 + $0x8] sm:$0xff]  ;;  %s3910_s8 = sld [smem:[#allocation33_spill]] (!%p3725_p12) }
 0x903   : > { %v2114_v2 = vmul.f32 %v2970_v7, %v2108_v8 }
 0x904   : > { %v2092_v6 = vsub.f32 1.5, %v2091_v5  ;;  %v2973_v5 = vld [vmem:[%s1281_s4] ss:$0 sm:$0xff]  ;;  %s2338_s4 = scalar_select %p1301_p6, 1, 0 }
 0x905   : > { %v2120_v14 = vadd.f32 %v2971_v12, %v2114_v2 }
 0x906   : > { %v2093_v9 = vmul.f32 %v3035_v63, %v2092_v6  ;;  %2226 = vmatpush.bf16.msra.mxu3 %v2880_v52 }
 0x908   : > { %v2097_v10 = vsel %vm2096_vm10, %v3035_v63, %v2093_v9 }
 0x909   : > { %v2109_v11 = vmul.f32 %v2097_v10, %v2058_v56 }
 0x90a   : > { %2227 = vmatpush.bf16.msra.mxu3 %v2879_v37 }
 0x90b   : > { %v2115_v13 = vmul.f32 %v2970_v7, %v2109_v11 }
 0x90d   : > { %v2121_v15 = vadd.f32 %v2971_v12, %v2115_v13 }
 0x90e   : > { %2324 = vmatpush.bf16.msrb.mxu3 %v2888_v0 }
 0x90f   : > { %v2123_v16 = vpack.c.bf16 %v2121_v15, %v2120_v14 }
 0x911   : > { %2799 = vmatmul.msk.bf16.vlgmr.msra.gmra.mxu1 %vm1379_vm3, %v2123_v16 }
 0x912   : > { %2325 = vmatpush.bf16.msrb.mxu3 %v2887_v1 }
 0x916   : > { %2326 = vmatpush.bf16.msrb.mxu3 %v2886_v3 }
 0x91a   : > { %2327 = vmatpush.bf16.msrb.mxu3 %v2885_v4 }
 0x94a   : > { %v2071_v17 = vpop.xlane.xlu0 %2070 }
 0x94b   : > { %v2074_v18 = vmul.f32 %v2071_v17, %v3474_v32  ;;  %v2339_v17 = vstv %s2338_s4 }
 0x94c   : > { %vm2340_vm15 = vcmp.eq.s32.totalorder %v2339_v17, 1 }
 0x94d   : > { %v2077_v19 = vadd.f32 1e-05, %v2074_v18 }
 0x94f   : > { %3036 = vrsqrt.f32 %v2077_v19  ;;  %vm2104_vm12 = vweird.f32 %v2077_v19 }
 0x955   : > { %v3037_v22 = vpop.eup %3036 }
 0x956   : > { %v2099_v25 = vmul.f32 %v3037_v22, %v2077_v19  ;;  %vm2105_vm11 = vweird.f32 %v3037_v22 }
 0x957   : > { %vm2106_vm13 = vmor %vm2104_vm12, %vm2105_vm11 }
 0x958   : > { %v2100_v26 = vmul.f32 %v3037_v22, %v2099_v25  ;;  %v3044_v25 = vld [vmem:[#allocation2] sm:$0xff] }
 0x95a   : > { %v2101_v27 = vmul.f32 0.5, %v2100_v26 }
 0x95c   : > { %v2102_v38 = vsub.f32 1.5, %v2101_v27 }
 0x95e   : > { %v2103_v29 = vmul.f32 %v3037_v22, %v2102_v38 }
 0x960   : > { %v2107_v30 = vsel %vm2106_vm13, %v3037_v22, %v2103_v29 }
 0x961   : > { %v2110_v20 = vmul.f32 %v2107_v30, %v3678_v44  ;;  %v2975_v30 = vld [vmem:[%s3907_s25] ss:$0 sm:$0xff] }
 0x963   : > { %v2116_v32 = vmul.f32 %v2970_v7, %v2110_v20 }
 0x965   : > { %v2122_v33 = vadd.f32 %v2971_v12, %v2116_v32 }
 0x967   : > { %v2234_v34 = vpack.c.bf16 %v2122_v33, %v2122_v33 }
 0x969   : > { %2825 = vmatmul.msk.bf16.vlgmr.msrb.gmra.mxu1 %vm1379_vm3, %v2234_v34 }
 0x98e   : > { %v2156_v21 = vpop.f32.mrf.mxu1 }
 0x98f   : > { %v2157_v56 = vadd.f32 %v2972_v36, %v2156_v21 }
 0x991   : > { %v2161_v39 = vmul.f32 %v2157_v56, %v2157_v56 }
 0x993   : > { %v2163_v40 = vmul.f32 %v2161_v39, %v2157_v56 }
 0x995   : > { %v2165_v42 = vmul.f32 0.044715, %v2163_v40 }
 0x996   : > { %v2158_v43 = vpop.f32.mrf.mxu1 }
 0x997   : > { %v2167_v44 = vadd.f32 %v2165_v42, %v2157_v56  ;;  %v2159_v45 = vadd.f32 %v2972_v36, %v2158_v43 }
 0x999   : > { %v2169_v46 = vmul.f32 0.7978846, %v2167_v44  ;;  %v2162_v47 = vmul.f32 %v2159_v45, %v2159_v45 }
 0x99b   : > { %v2164_v48 = vmul.f32 %v2162_v47, %v2159_v45  ;;  %3038 = vtanh.f32 %v2169_v46 }
 0x99d   : > { %v2166_v49 = vmul.f32 0.044715, %v2164_v48 }
 0x99f   : > { %v2168_v50 = vadd.f32 %v2166_v49, %v2159_v45 }
 0x9a1   : > { %v2170_v51 = vmul.f32 0.7978846, %v2168_v50  ;;  %v3039_v53 = vpop.eup %3038 }
 0x9a2   : > { %v2173_v54 = vadd.f32 1.0, %v3039_v53 }
 0x9a3   : > { %3040 = vtanh.f32 %v2170_v51 }
 0x9a4   : > { %v2175_v57 = vmul.f32 0.5, %v2173_v54 }
 0x9a6   : > { %v2177_v60 = vmul.f32 %v2175_v57, %v2157_v56 }
 0x9a9   : > { %v3041_v55 = vpop.eup %3040 }
 0x9aa   : > { %v2174_v58 = vadd.f32 1.0, %v3041_v55 }
 0x9ac   : > { %v2176_v59 = vmul.f32 0.5, %v2174_v58 }
 0x9ae   : > { %v2178_v61 = vmul.f32 %v2176_v59, %v2159_v45 }
 0x9b0   : > { %v2179_v63 = vpack.c.bf16 %v2178_v61, %v2177_v60 }
 0x9b2   : > { %2816 = vmatmul.msk.bf16.vlgmr.msra.gmra.mxu3 %vm2216_vm14, %v2179_v63 }
 0x9e6   : > { %v2267_v6 = vpop.f32.mrf.mxu1 }
 0x9e7   : > { %v2268_v7 = vadd.f32 %v2973_v5, %v2267_v6 }
 0x9e9   : > { %v2271_v8 = vmul.f32 %v2268_v7, %v2268_v7 }
 0x9eb   : > { %v2272_v9 = vmul.f32 %v2271_v8, %v2268_v7 }
 0x9ed   : > { %v2273_v10 = vmul.f32 0.044715, %v2272_v9 }
 0x9ee   : > { %v2269_v12 = vpop.f32.mrf.mxu1 }
 0x9ef   : > { %v2274_v2 = vadd.f32 %v2273_v10, %v2268_v7 }
 0x9f1   : > { %v2275_v11 = vmul.f32 0.7978846, %v2274_v2 }
 0x9f3   : > { %3042 = vtanh.f32 %v2275_v11 }
 0x9f9   : > { %v3043_v13 = vpop.eup %3042 }
 0x9fa   : > { %v2277_v14 = vadd.f32 1.0, %v3043_v13 }
 0x9fc   : > { %v2278_v15 = vmul.f32 0.5, %v2277_v14 }
 0x9fe   : > { %v2279_v16 = vmul.f32 %v2278_v15, %v2268_v7 }
 0xa00   : > { %v2280_v41 = vpack.c.bf16 %v2279_v16, %v2279_v16 }
 0xa02   : > { %2842 = vmatmul.msk.bf16.vlgmr.msrb.gmra.mxu3 %vm2216_vm14, %v2280_v41 }
 0xa35   : > { %v2229_v18 = vpop.f32.mrf.mxu3 }
 0xa36   : > { %v2230_v19 = vadd.f32 %v2974_v62, %v2229_v18 }
 0xa38   : > { %v2343_v22 = vadd.f32 %v2230_v19, %v3656_v23 }
 0xa3a   : > { %v2349_v26 = vsel %vm2340_vm15, %v3044_v25, %v2343_v22 }
 0xa3b   : > { %2351 = vst.msk [vmem:[#allocation2] sm:$0xff] %vm1379_vm3, %v2349_v26 }
 0xa3d   : > { %v2231_v27 = vpop.f32.mrf.mxu3 }
 0xa3e   : > { %v2232_v38 = vadd.f32 %v2974_v62, %v2231_v27 }
 0xa40   : > { %v2344_v29 = vadd.f32 %v2232_v38, %v3661_v28 }
 0xa42   : > { %2352 = vst.msk [vmem:[#allocation2 + $0x8] sm:$0xff] %vm1379_vm3, %v2344_v29 }
 0xa85   : > { %v2329_v20 = vpop.f32.mrf.mxu3 }
 0xa86   : > { %v2330_v32 = vadd.f32 %v2975_v30, %v2329_v20 }
 0xa88   : > { %v2353_v33 = vadd.f32 %v2330_v32, %v3666_v31 }
 0xa89   : > { %2360 = sbr.rel (%p3725_p12) target bundleno = 2981 (0xba5), region = 132 }
 0xa8a   : > { %2354 = vst.msk [vmem:[#allocation2 + $0x10] sm:$0xff] %vm1379_vm3, %v2353_v33 }
 0xa8d   : > { %v2331_v23 = vpop.f32.mrf.mxu3 }
 0xa8e   : > { %v2890_v28 = vld [vmem:[%s3908_s14 + $0x8] sm:$0xff]  ;;  %v2889_v34 = vld [vmem:[%s3908_s14] sm:$0xff]  ;;  %v2361_v35 = vpack.c.bf16 %v2349_v26, %v2349_v26  ;;  %vm2399_vm0 = vcmask 254976   ;;  %vm2438_vm1 = vcmask 33792  }
 0xa8f   : > { %2391 = vmatpush.bf16.msra.mxu0 %v2890_v28  ;;  %v2892_v31 = vld [vmem:[%s3909_s27 + $0x8] sm:$0xff]  ;;  %v2891_v24 = vld [vmem:[%s3909_s27] sm:$0xff] }
 0xa90   : > { %2431 = vmatpush.bf16.msra.mxu1 %v2892_v31  ;;  %v3045_v52 = vld [vmem:[%s3910_s8] ss:$0 sm:$0xff] }
 0xa91   : > { %v3046_v40 = vld [vmem:[%s3911_s22] ss:$0 sm:$0xff] }
 0xa93   : > { %2392 = vmatpush.bf16.msra.mxu0 %v2889_v34 }
 0xa94   : > { %2432 = vmatpush.bf16.msra.mxu1 %v2891_v24 }
 0xa96   : > { %2851 = vmatmul.msk.bf16.vlgmr.msra.gmra.mxu0 %vm1379_vm3, %v2361_v35 }
 0xb13   : > { %v2394_v36 = vpop.f32.mrf.mxu0 }
 0xb14   : > { %v2395_v37 = vadd.f32 %v3045_v52, %v2394_v36 }
 0xb16   : > { %3047 = vtanh.f32 %v2395_v37 }
 0xb1b   : > { %v2396_v21 = vpop.f32.mrf.mxu0 }
 0xb1c   : > { %v3048_v56 = vpop.eup %3047 }
 0xb1d   : > { %2400 = vst.msk [vmem:[#allocation6] sm:$0x3] %vm2399_vm0, %v3048_v56  ;;  %v2401_v39 = vpack.c.bf16 %v3048_v56, %v3048_v56 }
 0xb1f   : > { %2860 = vmatmul.msk.bf16.vlgmr.msra.gmra.mxu1 %vm1379_vm3, %v2401_v39 }
 0xb9c   : > { %v2434_v42 = vpop.f32.mrf.mxu1 }
 0xb9d   : > { %v2435_v43 = vadd.f32 %v3046_v40, %v2434_v42 }
 0xb9f   : > { %2439 = vst.msk [vmem:[#allocation4] sm:$0x3] %vm2438_vm1, %v2435_v43 }
 0xba4   : > { %v2436_v44 = vpop.f32.mrf.mxu1 }
 0xba5 PF: > { %s3912_s24 = sld [smem:[#allocation14_spill]]  ;;  %s3168_s29 = smov [#allocation4]  }
 0xba6   : > { %s3915_s7 = sld [smem:[#allocation36_spill]]  ;;  %s2446_s11 = sshll.u32 %s3168_s29, 4  ;;  %s2447_s11 = int_to_ptr.vmem [resolvable:$true] %s2446_s11 }
 0xba7   : > { %s3169_s30 = smov [#allocation6]   ;;  %s3916_s8 = sld [smem:[#allocation37_spill]] }
 0xba8   : > { %s2458_s28 = sshll.u32 %s3169_s30, 4  ;;  %s2459_s28 = int_to_ptr.vmem [resolvable:$true] %s2458_s28 }
 0xbab   : > { %s3913_s5 = sadd.s32 4294967295, %s3912_s24  }
 0xbac   : > { %p3771_p13 = scmp.eq.s32.totalorder %s3913_s5, 3  ;;  %s2448_s23 = sshll.u32 %s3915_s7, 4  ;;  %s2449_s23 = int_to_ptr.hbm [resolvable:$true] %s2448_s23 }
 0xbad   : > { %s2460_s4 = sshll.u32 %s3916_s8, 4  ;;  %s2461_s4 = int_to_ptr.hbm [resolvable:$true] %s2460_s4 }
 0xbae   : > { %2895 = dma.vmem_to_hbm [thread:$0]  (%p3771_p13), %s2447_s11, 32, %s2449_s23, [#allocation5]  }
 0xbaf   : > { %2897 = dma.vmem_to_hbm [thread:$0]  (%p3771_p13), %s2459_s28, 32, %s2461_s4, [#allocation7]  }
 0xbb0   : > { %3126 = dma.done.wait (%p3771_p13), [#allocation5], 32  }
 0xbb1   : > { %3128 = vsyncadd (%p3771_p13), [#allocation5], 4294967264 }
 0xbb2   : > { %3130 = dma.done.wait (%p3771_p13), [#allocation7], 32  }
 0xbb3   : > { %3132 = vsyncadd (%p3771_p13), [#allocation7], 4294967264 }
 0xbb4 PF: > { %s3917_s9 = sld [smem:[#allocation14_spill]] }
 0xbb5   : > { %s3918_s7 = sld [smem:[#allocation12_spill]] }
 0xbb6   : > { %s3919_s4 = sld [smem:[#allocation13_spill]] }
 0xbb7   : > { %s3920_s8 = sld [smem:[#allocation15_spill]] }
 0xbb8   : > { %s3921_s30 = sld [smem:[#allocation16_spill]] }
 0xbba   : > { %s40_s9 = sadd.s32 1, %s3917_s9  }
 0xbbb   : > { %p37_p0 = scmp.ge.s32.totalorder %s40_s9, 6  }
 0xbbd   :  { %39 = sbr.rel (!%p37_p0) target bundleno = 24 (0x18), region = 217 }
 0xbc2   :  { %2479 = vsyncpa [#allocation5], 1 }
 0xbc3   :  { %2481 = vsyncpa [#allocation5 + $0x1], 1 }
 0xbc4   :  { %2482 = vsyncpa [#allocation7], 1 }

</bundles_post_ra>
